<compile_context>
chip_gen: v5e
topology: v5e:2x2
jax: 0.10.0
libtpu: 0.0.40
codegen_flags: <defaults>
</compile_context>

<pallas_src>
import jax
import jax.numpy as jnp
import numpy as np
from jax import lax
from jax.experimental import pallas as pl
from jax.experimental.pallas import tpu as pltpu

K = 7            # ConvTranspose2d kernel size (both layers)
S = 3            # ConvTranspose2d stride (both layers)
NEG_SLOPE = 0.5  # torch.where(x > 0, x, 0.5 * x)


def _make_class_kernel(offsets, cin, L):
    """Build the per-layer kernel (one batch element per grid step).

    Refs:
      x_ref : (cin, Lin)       zero-padded, spatially flattened input
      w_ref : (9*cout, 9*cin)  residue-class weight matrix (zeros for taps that
                               fall outside the 7x7 kernel)
      b_ref : (9*cout, 1)      bias tiled per residue class
      o_ref : (9*cout, L)      per-class flattened output, L % 128 == 0
      p_ref : (9*cin, L)       VMEM scratch: im2col RHS shared by all 9 classes
    """

    def kernel(x_ref, w_ref, b_ref, o_ref, p_ref):
        # im2col: one contiguous slice per (th, tw) tap -> 9 bulk copies.
        for t, off in enumerate(offsets):
            p_ref[t * cin:(t + 1) * cin, :] = x_ref[:, off:off + L]
        # One MXU matmul evaluates all 9 residue classes at once.
        y = jnp.dot(w_ref[...], p_ref[...], preferred_element_type=jnp.float32)
        y = y + b_ref[...]
        o_ref[...] = jnp.maximum(y, NEG_SLOPE * y)          # leaky(0.5)

    return kernel


def _convt_leaky_layer(x, wmat, bvec, cout):
    """One ConvTranspose2d(k=7, s=3) + leaky(0.5): a single pallas_call over batch."""
    N, cin, Hin, Win = x.shape
    Wp = Win + 4                        # padded width == flattened output row pitch
    Mh = Hin + 2                        # output rows computed per residue class
    Mw = Win + 2                        # real output cols per residue class
    L_raw = Mh * Wp
    L = ((L_raw + 127) // 128) * 128    # lane-dense matmul / store width
    off_max = 2 * Wp + 2
    rows = -(-(off_max + L) // Wp)      # padded rows so every tap slice is in bounds
    xp = jnp.pad(x, ((0, 0), (0, 0), (2, rows - 2 - Hin), (2, 2)))
    xpf = xp.reshape(N, cin, rows * Wp)
    Lin = rows * Wp

    # Tap (th, tw) reads flat offsets [(2-th)*Wp + (2-tw), ... + L).
    offsets = tuple((2 - th) * Wp + (2 - tw) for th in range(3) for tw in range(3))

    out = pl.pallas_call(
        _make_class_kernel(offsets, cin, L),
        out_shape=jax.ShapeDtypeStruct((N, 9 * cout, L), jnp.float32),
        grid=(N,),
        in_specs=[
            pl.BlockSpec((None, cin, Lin), lambda n: (n, 0, 0)),
            pl.BlockSpec((9 * cout, 9 * cin), lambda n: (0, 0)),
            pl.BlockSpec((9 * cout, 1), lambda n: (0, 0)),
        ],
        out_specs=pl.BlockSpec((None, 9 * cout, L), lambda n: (n, 0, 0)),
        scratch_shapes=[pltpu.VMEM((9 * cin, L), jnp.float32)],
        compiler_params=pltpu.CompilerParams(dimension_semantics=("parallel",)),
    )(xpf, wmat, bvec)

    # Interleave residue classes back to NCHW (tiny, pure layout; plain XLA).
    OH, OW = S * (Hin - 1) + K, S * (Win - 1) + K
    cls = out[:, :, :L_raw].reshape(N, 3, 3, cout, Mh, Wp)[..., :Mw]
    y = jnp.transpose(cls, (0, 3, 4, 1, 5, 2)).reshape(N, cout, 3 * Mh, 3 * Mw)
    return y[:, :, :OH, :OW]


def _prep_class_weight(w):
    """ConvTranspose2d weight (Cin, Cout, 7, 7) -> residue-class matrix (9*Cout, 9*Cin).

    out[(rh*3+rw)*Cout + co, (th*3+tw)*Cin + ci] = w[ci, co, rh+3*th, rw+3*tw]
    (zero whenever rh+3*th >= 7 or rw+3*tw >= 7).
    """
    cin, cout = w.shape[0], w.shape[1]
    wp = jnp.pad(w, ((0, 0), (0, 0), (0, 2), (0, 2)))        # (ci, co, 9, 9)
    wp = wp.reshape(cin, cout, 3, 3, 3, 3)                   # (ci, co, th, rh, tw, rw)
    wm = jnp.transpose(wp, (3, 5, 1, 2, 4, 0))               # (rh, rw, co, th, tw, ci)
    return wm.reshape(9 * cout, 9 * cin)


@jax.jit
def model_forward(x, w1, b1, w2, b2):
    cout1, cout2 = w1.shape[1], w2.shape[1]
    w1m, w2m = _prep_class_weight(w1), _prep_class_weight(w2)
    b1m = jnp.tile(b1, (9,)).reshape(9 * cout1, 1)
    b2m = jnp.tile(b2, (9,)).reshape(9 * cout2, 1)
    y1 = _convt_leaky_layer(x, w1m, b1m, cout1)      # ConvT(12->6) + leaky(0.5)
    y2 = _convt_leaky_layer(y1, w2m, b2m, cout2)     # ConvT(6->1)  + leaky(0.5)
    return y2


def torch_like_ref(x, w1, b1, w2, b2):
    """Pure-JAX reference for the PyTorch forward (verification only)."""
    def convt(x, w, b, stride, k):
        wf = jnp.transpose(w, (1, 0, 2, 3))[:, :, ::-1, ::-1]   # (Cout, Cin, k, k)
        y = lax.conv_general_dilated(
            x, wf, window_strides=(1, 1),
            padding=[(k - 1, k - 1), (k - 1, k - 1)],
            lhs_dilation=(stride, stride),
            dimension_numbers=("NCHW", "OIHW", "NCHW"))
        return y + b.reshape(1, -1, 1, 1)

    y1 = convt(x, w1, b1, S, K)
    y1 = jnp.where(y1 > 0, y1, y1 * NEG_SLOPE)
    y2 = convt(y1, w2, b2, S, K)
    return jnp.where(y2 > 0, y2, y2 * NEG_SLOPE)


if __name__ == "__main__":
    key = jax.random.PRNGKey(0)
    kx, kw1, kb1, kw2, kb2 = jax.random.split(key, 5)

    # Small shapes consistent with the module: batch=2, in_ch=12 (fixed), spatial=8.
    x = jax.random.normal(kx, (2, 12, 8, 8), jnp.float32)
    w1 = jax.random.uniform(kw1, (12, 6, 7, 7), jnp.float32, -0.05, 0.05)
    b1 = jax.random.uniform(kb1, (6,), jnp.float32, -0.05, 0.05)
    w2 = jax.random.uniform(kw2, (6, 1, 7, 7), jnp.float32, -0.05, 0.05)
    b2 = jax.random.uniform(kb2, (1,), jnp.float32, -0.05, 0.05)

    out = jax.block_until_ready(model_forward(x, w1, b1, w2, b2))
    assert out.shape == (2, 1, 88, 88), out.shape    # 8 -> 28 -> 88

    ref = torch_like_ref(x, w1, b1, w2, b2)
    np.testing.assert_allclose(np.asarray(out), np.asarray(ref), rtol=3e-3, atol=3e-3)

    print("KERNEL_OK")
</pallas_src>

<mosaic_0001>
module attributes {stable_mosaic.version = 11 : i64} {
  func.func @kernel(%arg0: i32, %arg1: memref<1x12x156xf32, #tpu.memory_space<vmem>>, %arg2: memref<54x108xf32, #tpu.memory_space<vmem>>, %arg3: memref<54x1xf32, #tpu.memory_space<vmem>>, %arg4: memref<1x54x128xf32, #tpu.memory_space<vmem>>, %arg5: memref<108x128xf32, #tpu.memory_space<vmem>>) attributes {dimension_semantics = [#tpu.dimension_semantics<parallel>], iteration_bounds = array<i64: 2>, scalar_prefetch = 0 : i64, scratch_operands = 1 : i64, tpu.core_type = #tpu.core_type<tc>, window_params = [{transform_indices = @transform_0, window_bounds = array<i64: 1, 12, 156>}, {pipeline_mode = #tpu.pipeline_mode<synchronous>, transform_indices = @transform_1, window_bounds = array<i64: 54, 108>}, {pipeline_mode = #tpu.pipeline_mode<synchronous>, transform_indices = @transform_2, window_bounds = array<i64: 54, 1>}, {transform_indices = @transform_3, window_bounds = array<i64: 1, 54, 128>}]} {
    %c0 = arith.constant 0 : index
    %c0_0 = arith.constant 0 : index
    %c26 = arith.constant 26 : index
    %0 = vector.load %arg1[%c0, %c0_0, %c26] : memref<1x12x156xf32, #tpu.memory_space<vmem>>, vector<1x12x128xf32>
    %1 = vector.shape_cast %0 : vector<1x12x128xf32> to vector<12x128xf32>
    %c0_1 = arith.constant 0 : index
    %c0_2 = arith.constant 0 : index
    %2 = vector.load %arg5[%c0_1, %c0_2] : memref<108x128xf32, #tpu.memory_space<vmem>>, vector<12x128xf32>
    tpu.vector_store %arg5[%c0_1, %c0_2], %1 {strides = array<i32>} : memref<108x128xf32, #tpu.memory_space<vmem>>, vector<12x128xf32>,
    %c0_3 = arith.constant 0 : index
    %c0_4 = arith.constant 0 : index
    %c25 = arith.constant 25 : index
    %3 = vector.load %arg1[%c0_3, %c0_4, %c25] : memref<1x12x156xf32, #tpu.memory_space<vmem>>, vector<1x12x128xf32>
    %4 = vector.shape_cast %3 : vector<1x12x128xf32> to vector<12x128xf32>
    %c12 = arith.constant 12 : index
    %c0_5 = arith.constant 0 : index
    %5 = vector.load %arg5[%c12, %c0_5] : memref<108x128xf32, #tpu.memory_space<vmem>>, vector<12x128xf32>
    tpu.vector_store %arg5[%c12, %c0_5], %4 {strides = array<i32>} : memref<108x128xf32, #tpu.memory_space<vmem>>, vector<12x128xf32>,
    %c0_6 = arith.constant 0 : index
    %c0_7 = arith.constant 0 : index
    %c24 = arith.constant 24 : index
    %6 = vector.load %arg1[%c0_6, %c0_7, %c24] : memref<1x12x156xf32, #tpu.memory_space<vmem>>, vector<1x12x128xf32>
    %7 = vector.shape_cast %6 : vector<1x12x128xf32> to vector<12x128xf32>
    %c24_8 = arith.constant 24 : index
    %c0_9 = arith.constant 0 : index
    %8 = vector.load %arg5[%c24_8, %c0_9] : memref<108x128xf32, #tpu.memory_space<vmem>>, vector<12x128xf32>
    tpu.vector_store %arg5[%c24_8, %c0_9], %7 {strides = array<i32>} : memref<108x128xf32, #tpu.memory_space<vmem>>, vector<12x128xf32>,
    %c0_10 = arith.constant 0 : index
    %c0_11 = arith.constant 0 : index
    %c14 = arith.constant 14 : index
    %9 = vector.load %arg1[%c0_10, %c0_11, %c14] : memref<1x12x156xf32, #tpu.memory_space<vmem>>, vector<1x12x128xf32>
    %10 = vector.shape_cast %9 : vector<1x12x128xf32> to vector<12x128xf32>
    %c36 = arith.constant 36 : index
    %c0_12 = arith.constant 0 : index
    %11 = vector.load %arg5[%c36, %c0_12] : memref<108x128xf32, #tpu.memory_space<vmem>>, vector<12x128xf32>
    tpu.vector_store %arg5[%c36, %c0_12], %10 {strides = array<i32>} : memref<108x128xf32, #tpu.memory_space<vmem>>, vector<12x128xf32>,
    %c0_13 = arith.constant 0 : index
    %c0_14 = arith.constant 0 : index
    %c13 = arith.constant 13 : index
    %12 = vector.load %arg1[%c0_13, %c0_14, %c13] : memref<1x12x156xf32, #tpu.memory_space<vmem>>, vector<1x12x128xf32>
    %13 = vector.shape_cast %12 : vector<1x12x128xf32> to vector<12x128xf32>
    %c48 = arith.constant 48 : index
    %c0_15 = arith.constant 0 : index
    %14 = vector.load %arg5[%c48, %c0_15] : memref<108x128xf32, #tpu.memory_space<vmem>>, vector<12x128xf32>
    tpu.vector_store %arg5[%c48, %c0_15], %13 {strides = array<i32>} : memref<108x128xf32, #tpu.memory_space<vmem>>, vector<12x128xf32>,
    %c0_16 = arith.constant 0 : index
    %c0_17 = arith.constant 0 : index
    %c12_18 = arith.constant 12 : index
    %15 = vector.load %arg1[%c0_16, %c0_17, %c12_18] : memref<1x12x156xf32, #tpu.memory_space<vmem>>, vector<1x12x128xf32>
    %16 = vector.shape_cast %15 : vector<1x12x128xf32> to vector<12x128xf32>
    %c60 = arith.constant 60 : index
    %c0_19 = arith.constant 0 : index
    %17 = vector.load %arg5[%c60, %c0_19] : memref<108x128xf32, #tpu.memory_space<vmem>>, vector<12x128xf32>
    tpu.vector_store %arg5[%c60, %c0_19], %16 {strides = array<i32>} : memref<108x128xf32, #tpu.memory_space<vmem>>, vector<12x128xf32>,
    %c0_20 = arith.constant 0 : index
    %c0_21 = arith.constant 0 : index
    %c2 = arith.constant 2 : index
    %18 = vector.load %arg1[%c0_20, %c0_21, %c2] : memref<1x12x156xf32, #tpu.memory_space<vmem>>, vector<1x12x128xf32>
    %19 = vector.shape_cast %18 : vector<1x12x128xf32> to vector<12x128xf32>
    %c72 = arith.constant 72 : index
    %c0_22 = arith.constant 0 : index
    %20 = vector.load %arg5[%c72, %c0_22] : memref<108x128xf32, #tpu.memory_space<vmem>>, vector<12x128xf32>
    tpu.vector_store %arg5[%c72, %c0_22], %19 {strides = array<i32>} : memref<108x128xf32, #tpu.memory_space<vmem>>, vector<12x128xf32>,
    %c0_23 = arith.constant 0 : index
    %c0_24 = arith.constant 0 : index
    %c1 = arith.constant 1 : index
    %21 = vector.load %arg1[%c0_23, %c0_24, %c1] : memref<1x12x156xf32, #tpu.memory_space<vmem>>, vector<1x12x128xf32>
    %22 = vector.shape_cast %21 : vector<1x12x128xf32> to vector<12x128xf32>
    %c84 = arith.constant 84 : index
    %c0_25 = arith.constant 0 : index
    %23 = vector.load %arg5[%c84, %c0_25] : memref<108x128xf32, #tpu.memory_space<vmem>>, vector<12x128xf32>
    tpu.vector_store %arg5[%c84, %c0_25], %22 {strides = array<i32>} : memref<108x128xf32, #tpu.memory_space<vmem>>, vector<12x128xf32>,
    %c0_26 = arith.constant 0 : index
    %c0_27 = arith.constant 0 : index
    %c0_28 = arith.constant 0 : index
    %24 = vector.load %arg1[%c0_26, %c0_27, %c0_28] : memref<1x12x156xf32, #tpu.memory_space<vmem>>, vector<1x12x128xf32>
    %25 = vector.shape_cast %24 : vector<1x12x128xf32> to vector<12x128xf32>
    %c96 = arith.constant 96 : index
    %c0_29 = arith.constant 0 : index
    %26 = vector.load %arg5[%c96, %c0_29] : memref<108x128xf32, #tpu.memory_space<vmem>>, vector<12x128xf32>
    tpu.vector_store %arg5[%c96, %c0_29], %25 {strides = array<i32>} : memref<108x128xf32, #tpu.memory_space<vmem>>, vector<12x128xf32>,
    %c0_30 = arith.constant 0 : index
    %c0_31 = arith.constant 0 : index
    %27 = vector.load %arg2[%c0_30, %c0_31] : memref<54x108xf32, #tpu.memory_space<vmem>>, vector<54x108xf32>
    %c0_32 = arith.constant 0 : index
    %c0_33 = arith.constant 0 : index
    %28 = vector.load %arg5[%c0_32, %c0_33] : memref<108x128xf32, #tpu.memory_space<vmem>>, vector<108x128xf32>
    %cst = arith.constant dense<0.000000e+00> : vector<54x128xf32>
    %29 = tpu.matmul %27, %28, %cst {dimension_numbers = #tpu.dot_dimension_numbers<[1], [0], [0], [1], [0, 0, 1, 1], [], []>} : vector<54x108xf32>, vector<108x128xf32>, vector<54x128xf32> -> vector<54x128xf32>
    %c0_34 = arith.constant 0 : index
    %c0_35 = arith.constant 0 : index
    %30 = vector.load %arg3[%c0_34, %c0_35] : memref<54x1xf32, #tpu.memory_space<vmem>>, vector<54x1xf32>
    %31 = vector.broadcast %30 : vector<54x1xf32> to vector<54x128xf32>
    %32 = arith.addf %29, %31 : vector<54x128xf32>
    %cst_36 = arith.constant 5.000000e-01 : f32
    %33 = vector.broadcast %cst_36 : f32 to vector<54x128xf32>
    %34 = arith.mulf %33, %32 : vector<54x128xf32>
    %35 = arith.maximumf %32, %34 : vector<54x128xf32>
    %c0_37 = arith.constant 0 : index
    %c0_38 = arith.constant 0 : index
    %c0_39 = arith.constant 0 : index
    %36 = vector.load %arg4[%c0_37, %c0_38, %c0_39] : memref<1x54x128xf32, #tpu.memory_space<vmem>>, vector<1x54x128xf32>
    %37 = vector.shape_cast %36 : vector<1x54x128xf32> to vector<54x128xf32>
    %38 = vector.shape_cast %35 : vector<54x128xf32> to vector<1x54x128xf32>
    tpu.vector_store %arg4[%c0_37, %c0_38, %c0_39], %38 {strides = array<i32>} : memref<1x54x128xf32, #tpu.memory_space<vmem>>, vector<1x54x128xf32>,
    return
  }
  func.func @transform_0(%arg0: i32) -> (i32, i32, i32) {
    %c0_i32 = arith.constant 0 : i32
    %c0_i32_0 = arith.constant 0 : i32
    %c0_i32_1 = arith.constant 0 : i32
    return %arg0, %c0_i32, %c0_i32_0 : i32, i32, i32
  }
  func.func @transform_1(%arg0: i32) -> (i32, i32) {
    %c0_i32 = arith.constant 0 : i32
    %c0_i32_0 = arith.constant 0 : i32
    %c0_i32_1 = arith.constant 0 : i32
    return %c0_i32, %c0_i32_0 : i32, i32
  }
  func.func @transform_2(%arg0: i32) -> (i32, i32) {
    %c0_i32 = arith.constant 0 : i32
    %c0_i32_0 = arith.constant 0 : i32
    %c0_i32_1 = arith.constant 0 : i32
    return %c0_i32, %c0_i32_0 : i32, i32
  }
  func.func @transform_3(%arg0: i32) -> (i32, i32, i32) {
    %c0_i32 = arith.constant 0 : i32
    %c0_i32_0 = arith.constant 0 : i32
    %c0_i32_1 = arith.constant 0 : i32
    return %arg0, %c0_i32, %c0_i32_0 : i32, i32, i32
  }
}

module attributes {stable_mosaic.version = 11 : i64} {
  func.func @kernel(%arg0: i32, %arg1: memref<1x6x1120xf32, #tpu.memory_space<vmem>>, %arg2: memref<9x54xf32, #tpu.memory_space<vmem>>, %arg3: memref<9x1xf32, #tpu.memory_space<vmem>>, %arg4: memref<1x9x1024xf32, #tpu.memory_space<vmem>>, %arg5: memref<54x1024xf32, #tpu.memory_space<vmem>>) attributes {dimension_semantics = [#tpu.dimension_semantics<parallel>], iteration_bounds = array<i64: 2>, scalar_prefetch = 0 : i64, scratch_operands = 1 : i64, tpu.core_type = #tpu.core_type<tc>, window_params = [{transform_indices = @transform_0, window_bounds = array<i64: 1, 6, 1120>}, {pipeline_mode = #tpu.pipeline_mode<synchronous>, transform_indices = @transform_1, window_bounds = array<i64: 9, 54>}, {pipeline_mode = #tpu.pipeline_mode<synchronous>, transform_indices = @transform_2, window_bounds = array<i64: 9, 1>}, {transform_indices = @transform_3, window_bounds = array<i64: 1, 9, 1024>}]} {
    %c0 = arith.constant 0 : index
    %c0_0 = arith.constant 0 : index
    %c66 = arith.constant 66 : index
    %0 = vector.load %arg1[%c0, %c0_0, %c66] : memref<1x6x1120xf32, #tpu.memory_space<vmem>>, vector<1x6x1024xf32>
    %1 = vector.shape_cast %0 : vector<1x6x1024xf32> to vector<6x1024xf32>
    %c0_1 = arith.constant 0 : index
    %c0_2 = arith.constant 0 : index
    %2 = vector.load %arg5[%c0_1, %c0_2] : memref<54x1024xf32, #tpu.memory_space<vmem>>, vector<6x1024xf32>
    tpu.vector_store %arg5[%c0_1, %c0_2], %1 {strides = array<i32>} : memref<54x1024xf32, #tpu.memory_space<vmem>>, vector<6x1024xf32>,
    %c0_3 = arith.constant 0 : index
    %c0_4 = arith.constant 0 : index
    %c65 = arith.constant 65 : index
    %3 = vector.load %arg1[%c0_3, %c0_4, %c65] : memref<1x6x1120xf32, #tpu.memory_space<vmem>>, vector<1x6x1024xf32>
    %4 = vector.shape_cast %3 : vector<1x6x1024xf32> to vector<6x1024xf32>
    %c6 = arith.constant 6 : index
    %c0_5 = arith.constant 0 : index
    %5 = vector.load %arg5[%c6, %c0_5] : memref<54x1024xf32, #tpu.memory_space<vmem>>, vector<6x1024xf32>
    tpu.vector_store %arg5[%c6, %c0_5], %4 {strides = array<i32>} : memref<54x1024xf32, #tpu.memory_space<vmem>>, vector<6x1024xf32>,
    %c0_6 = arith.constant 0 : index
    %c0_7 = arith.constant 0 : index
    %c64 = arith.constant 64 : index
    %6 = vector.load %arg1[%c0_6, %c0_7, %c64] : memref<1x6x1120xf32, #tpu.memory_space<vmem>>, vector<1x6x1024xf32>
    %7 = vector.shape_cast %6 : vector<1x6x1024xf32> to vector<6x1024xf32>
    %c12 = arith.constant 12 : index
    %c0_8 = arith.constant 0 : index
    %8 = vector.load %arg5[%c12, %c0_8] : memref<54x1024xf32, #tpu.memory_space<vmem>>, vector<6x1024xf32>
    tpu.vector_store %arg5[%c12, %c0_8], %7 {strides = array<i32>} : memref<54x1024xf32, #tpu.memory_space<vmem>>, vector<6x1024xf32>,
    %c0_9 = arith.constant 0 : index
    %c0_10 = arith.constant 0 : index
    %c34 = arith.constant 34 : index
    %9 = vector.load %arg1[%c0_9, %c0_10, %c34] : memref<1x6x1120xf32, #tpu.memory_space<vmem>>, vector<1x6x1024xf32>
    %10 = vector.shape_cast %9 : vector<1x6x1024xf32> to vector<6x1024xf32>
    %c18 = arith.constant 18 : index
    %c0_11 = arith.constant 0 : index
    %11 = vector.load %arg5[%c18, %c0_11] : memref<54x1024xf32, #tpu.memory_space<vmem>>, vector<6x1024xf32>
    tpu.vector_store %arg5[%c18, %c0_11], %10 {strides = array<i32>} : memref<54x1024xf32, #tpu.memory_space<vmem>>, vector<6x1024xf32>,
    %c0_12 = arith.constant 0 : index
    %c0_13 = arith.constant 0 : index
    %c33 = arith.constant 33 : index
    %12 = vector.load %arg1[%c0_12, %c0_13, %c33] : memref<1x6x1120xf32, #tpu.memory_space<vmem>>, vector<1x6x1024xf32>
    %13 = vector.shape_cast %12 : vector<1x6x1024xf32> to vector<6x1024xf32>
    %c24 = arith.constant 24 : index
    %c0_14 = arith.constant 0 : index
    %14 = vector.load %arg5[%c24, %c0_14] : memref<54x1024xf32, #tpu.memory_space<vmem>>, vector<6x1024xf32>
    tpu.vector_store %arg5[%c24, %c0_14], %13 {strides = array<i32>} : memref<54x1024xf32, #tpu.memory_space<vmem>>, vector<6x1024xf32>,
    %c0_15 = arith.constant 0 : index
    %c0_16 = arith.constant 0 : index
    %c32 = arith.constant 32 : index
    %15 = vector.load %arg1[%c0_15, %c0_16, %c32] : memref<1x6x1120xf32, #tpu.memory_space<vmem>>, vector<1x6x1024xf32>
    %16 = vector.shape_cast %15 : vector<1x6x1024xf32> to vector<6x1024xf32>
    %c30 = arith.constant 30 : index
    %c0_17 = arith.constant 0 : index
    %17 = vector.load %arg5[%c30, %c0_17] : memref<54x1024xf32, #tpu.memory_space<vmem>>, vector<6x1024xf32>
    tpu.vector_store %arg5[%c30, %c0_17], %16 {strides = array<i32>} : memref<54x1024xf32, #tpu.memory_space<vmem>>, vector<6x1024xf32>,
    %c0_18 = arith.constant 0 : index
    %c0_19 = arith.constant 0 : index
    %c2 = arith.constant 2 : index
    %18 = vector.load %arg1[%c0_18, %c0_19, %c2] : memref<1x6x1120xf32, #tpu.memory_space<vmem>>, vector<1x6x1024xf32>
    %19 = vector.shape_cast %18 : vector<1x6x1024xf32> to vector<6x1024xf32>
    %c36 = arith.constant 36 : index
    %c0_20 = arith.constant 0 : index
    %20 = vector.load %arg5[%c36, %c0_20] : memref<54x1024xf32, #tpu.memory_space<vmem>>, vector<6x1024xf32>
    tpu.vector_store %arg5[%c36, %c0_20], %19 {strides = array<i32>} : memref<54x1024xf32, #tpu.memory_space<vmem>>, vector<6x1024xf32>,
    %c0_21 = arith.constant 0 : index
    %c0_22 = arith.constant 0 : index
    %c1 = arith.constant 1 : index
    %21 = vector.load %arg1[%c0_21, %c0_22, %c1] : memref<1x6x1120xf32, #tpu.memory_space<vmem>>, vector<1x6x1024xf32>
    %22 = vector.shape_cast %21 : vector<1x6x1024xf32> to vector<6x1024xf32>
    %c42 = arith.constant 42 : index
    %c0_23 = arith.constant 0 : index
    %23 = vector.load %arg5[%c42, %c0_23] : memref<54x1024xf32, #tpu.memory_space<vmem>>, vector<6x1024xf32>
    tpu.vector_store %arg5[%c42, %c0_23], %22 {strides = array<i32>} : memref<54x1024xf32, #tpu.memory_space<vmem>>, vector<6x1024xf32>,
    %c0_24 = arith.constant 0 : index
    %c0_25 = arith.constant 0 : index
    %c0_26 = arith.constant 0 : index
    %24 = vector.load %arg1[%c0_24, %c0_25, %c0_26] : memref<1x6x1120xf32, #tpu.memory_space<vmem>>, vector<1x6x1024xf32>
    %25 = vector.shape_cast %24 : vector<1x6x1024xf32> to vector<6x1024xf32>
    %c48 = arith.constant 48 : index
    %c0_27 = arith.constant 0 : index
    %26 = vector.load %arg5[%c48, %c0_27] : memref<54x1024xf32, #tpu.memory_space<vmem>>, vector<6x1024xf32>
    tpu.vector_store %arg5[%c48, %c0_27], %25 {strides = array<i32>} : memref<54x1024xf32, #tpu.memory_space<vmem>>, vector<6x1024xf32>,
    %c0_28 = arith.constant 0 : index
    %c0_29 = arith.constant 0 : index
    %27 = vector.load %arg2[%c0_28, %c0_29] : memref<9x54xf32, #tpu.memory_space<vmem>>, vector<9x54xf32>
    %c0_30 = arith.constant 0 : index
    %c0_31 = arith.constant 0 : index
    %28 = vector.load %arg5[%c0_30, %c0_31] : memref<54x1024xf32, #tpu.memory_space<vmem>>, vector<54x1024xf32>
    %cst = arith.constant dense<0.000000e+00> : vector<9x1024xf32>
    %29 = tpu.matmul %27, %28, %cst {dimension_numbers = #tpu.dot_dimension_numbers<[1], [0], [0], [1], [0, 0, 1, 1], [], []>} : vector<9x54xf32>, vector<54x1024xf32>, vector<9x1024xf32> -> vector<9x1024xf32>
    %c0_32 = arith.constant 0 : index
    %c0_33 = arith.constant 0 : index
    %30 = vector.load %arg3[%c0_32, %c0_33] : memref<9x1xf32, #tpu.memory_space<vmem>>, vector<9x1xf32>
    %31 = vector.broadcast %30 : vector<9x1xf32> to vector<9x1024xf32>
    %32 = arith.addf %29, %31 : vector<9x1024xf32>
    %cst_34 = arith.constant 5.000000e-01 : f32
    %33 = vector.broadcast %cst_34 : f32 to vector<9x1024xf32>
    %34 = arith.mulf %33, %32 : vector<9x1024xf32>
    %35 = arith.maximumf %32, %34 : vector<9x1024xf32>
    %c0_35 = arith.constant 0 : index
    %c0_36 = arith.constant 0 : index
    %c0_37 = arith.constant 0 : index
    %36 = vector.load %arg4[%c0_35, %c0_36, %c0_37] : memref<1x9x1024xf32, #tpu.memory_space<vmem>>, vector<1x9x1024xf32>
    %37 = vector.shape_cast %36 : vector<1x9x1024xf32> to vector<9x1024xf32>
    %38 = vector.shape_cast %35 : vector<9x1024xf32> to vector<1x9x1024xf32>
    tpu.vector_store %arg4[%c0_35, %c0_36, %c0_37], %38 {strides = array<i32>} : memref<1x9x1024xf32, #tpu.memory_space<vmem>>, vector<1x9x1024xf32>,
    return
  }
  func.func @transform_0(%arg0: i32) -> (i32, i32, i32) {
    %c0_i32 = arith.constant 0 : i32
    %c0_i32_0 = arith.constant 0 : i32
    %c0_i32_1 = arith.constant 0 : i32
    return %arg0, %c0_i32, %c0_i32_0 : i32, i32, i32
  }
  func.func @transform_1(%arg0: i32) -> (i32, i32) {
    %c0_i32 = arith.constant 0 : i32
    %c0_i32_0 = arith.constant 0 : i32
    %c0_i32_1 = arith.constant 0 : i32
    return %c0_i32, %c0_i32_0 : i32, i32
  }
  func.func @transform_2(%arg0: i32) -> (i32, i32) {
    %c0_i32 = arith.constant 0 : i32
    %c0_i32_0 = arith.constant 0 : i32
    %c0_i32_1 = arith.constant 0 : i32
    return %c0_i32, %c0_i32_0 : i32, i32
  }
  func.func @transform_3(%arg0: i32) -> (i32, i32, i32) {
    %c0_i32 = arith.constant 0 : i32
    %c0_i32_0 = arith.constant 0 : i32
    %c0_i32_1 = arith.constant 0 : i32
    return %arg0, %c0_i32, %c0_i32_0 : i32, i32, i32
  }
}

</mosaic_0001>

<bundles_post_ra>
// kernel: tile.17
= control target key start
LH: loop header
LB: loop body
LE: loop exit
PB: predicated region body
PF: predicated region fallthrough
CT: control target
= control target key end

     0   :  { %s26_s0 = inlined_call_operand.<no memory space> [shape: f32[], index: 0, kind: input, shape index: {}]   ;;  %s27_s1 = inlined_call_operand.vmem [shape: f32[9,1], index: 1, kind: output, shape index: {}]  }
   0x1   :  { %v2_v0 = vstv %s26_s0 }
   0x2   :  { %3 = vst [vmem:[%s27_s1] sm:$0xff] %v2_v0 }
   0x3   :  { %6 = vst [vmem:[%s27_s1 + $0x8] sm:$0xff] %v2_v0 }

// kernel: tile.12
= control target key start
LH: loop header
LB: loop body
LE: loop exit
PB: predicated region body
PF: predicated region fallthrough
CT: control target
= control target key end

     0   :  { %2 = vsyncpa [#allocation1], 0  ;;  %s51_s8 = smov [#allocation0]   ;;  %s71_s0 = inlined_call_operand.hbm [shape: f32[6], index: 0, kind: input, shape index: {}]   ;;  %s72_s1 = inlined_call_operand.vmem [shape: f32[9,6], index: 1, kind: output, shape index: {}]  }
   0x1   :  { %s8_s0 = sshll.u32 %s71_s0, 4  ;;  %s10_s9 = sshll.u32 %s51_s8, 4  ;;  %s9_s0 = int_to_ptr.hbm [resolvable:$true] %s8_s0  ;;  %s11_s9 = int_to_ptr.vmem [resolvable:$true] %s10_s9 }
   0x2   :  { %13 = dma.hbm_to_vmem [thread:$0]  %s9_s0, 16, %s11_s9, [#allocation1]  }
   0x3   :  { %49 = dma.done.wait [#allocation1], 16  }
   0x4   :  { %50 = vsyncadd [#allocation1], 4294967280  ;;  %v18_v0 = vld [vmem:[#allocation0] ss:$0 sm:$0xff] }
   0x5   :  { %19 = vst [vmem:[%s72_s1] sm:$0xff] %v18_v0 }
   0x6   :  { %23 = vst [vmem:[%s72_s1 + $0x8] sm:$0xff] %v18_v0 }
   0x7   :  { %22 = vsyncpa [#allocation1], 1 }

// kernel: tile.0
= control target key start
LH: loop header
LB: loop body
LE: loop exit
PB: predicated region body
PF: predicated region fallthrough
CT: control target
= control target key end

     0   :  { %s142_s10 = smov 127   ;;  %s143_s11 = smov 126   ;;  %vm3_vm0 = vcmask 7168   ;;  %s292_s0 = inlined_call_operand.vmem [shape: f32[9,6], index: 0, kind: input, shape index: {}]   ;;  %s293_s1 = inlined_call_operand.vmem [shape: f32[54,1], index: 1, kind: output, shape index: {}]  }
   0x1   :  { %v10_v0 = vld.sshfl [vmem:[%s292_s0] sm:$0xff pattern:$0x43827160]   ;;  %s144_s14 = smov 125   ;;  %v111_v4 = vld [vmem:[%s292_s0 + $0x5] sm:$0x1]  }
   0x2   :  { %v29_v1 = vld.sshfl [vmem:[%s292_s0] sm:$0xff pattern:$0x38271605]   ;;  %11 = vrot.lane.b32.xlu0 %v10_v0, %s142_s10  ;;  %v117_v5 = vld [vmem:[%s292_s0 + $0x4] sm:$0x1]   ;;  %s145_s29 = smov 124  }
   0x3   :  { %30 = vrot.lane.b32.xlu1 %v29_v1, %s143_s11  ;;  %v2_v2 = vld [vmem:[%s292_s0] sm:$0xff]   ;;  %49 = vrot.lane.b32.xlu2 %v29_v1, %s144_s14  ;;  %v105_v3 = vld [vmem:[%s292_s0 + $0x8] sm:$0x1]   ;;  %s146_s30 = smov 123  }
   0x4   :  { %4 = vst.msk [vmem:[%s293_s1] ss:$6 sm:$0xff] %vm3_vm0, %v2_v2   ;;  %v123_v6 = vld [vmem:[%s292_s0 + $0x4] sm:$0x1]  }
   0x5   :  { %106 = vst.msk [vmem:[%s293_s1 + $0x30] sm:$0x1] %vm3_vm0, %v105_v3   ;;  %v129_v7 = vld [vmem:[%s292_s0 + $0x4] sm:$0x1]  }
   0x6   :  { %v135_v8 = vld [vmem:[%s292_s0 + $0x4] sm:$0x1]  }
   0xa   :  { %24 = vrot.lane.b32.xlu0 %v111_v4, %s142_s10 }
   0xb   :  { %43 = vrot.lane.b32.xlu1 %v117_v5, %s143_s11  ;;  %62 = vrot.lane.b32.xlu2 %v123_v6, %s144_s14 }
  0x12   :  { %68 = vrot.lane.b32.xlu0 %v29_v1, %s145_s29 }
  0x13   :  { %81 = vrot.lane.b32.xlu1 %v129_v7, %s145_s29  ;;  %87 = vrot.lane.b32.xlu2 %v29_v1, %s146_s30 }
  0x1a   :  { %100 = vrot.lane.b32.xlu0 %v135_v8, %s146_s30 }
  0x5d   :  { %v50_v9 = vpop.permute.xlu2 %49  }
  0x5e   :  { %119 = vst.msk [vmem:[%s293_s1 + $0x21] ss:$-30 sm:$0x3] %vm3_vm0, %v50_v9  }
  0x5f   :  { %120 = vst.msk [vmem:[%s293_s1 + $0x63] ss:$-30 sm:$0xc] %vm3_vm0, %v50_v9  }
  0x60   :  { %121 = vst.msk [vmem:[%s293_s1 + $0xa5] ss:$-30 sm:$0x30] %vm3_vm0, %v50_v9  }
  0x61   :  { %122 = vst.msk [vmem:[%s293_s1 + $0xe7] ss:$-30 sm:$0xc0] %vm3_vm0, %v50_v9  }
  0x65   :  { %v63_v10 = vpop.permute.xlu2 %62  }
  0x66   :  { %124 = vst.msk [vmem:[%s293_s1 + $0x1b] sm:$0x1] %vm3_vm0, %v63_v10  }
  0x6d   :  { %v88_v11 = vpop.permute.xlu2 %87  }
  0x6e   :  { %131 = vst.msk [vmem:[%s293_s1 + $0x23] ss:$-30 sm:$0x3] %vm3_vm0, %v88_v11  }
  0x6f   :  { %132 = vst.msk [vmem:[%s293_s1 + $0x65] ss:$-30 sm:$0xc] %vm3_vm0, %v88_v11  }
  0x70   :  { %133 = vst.msk [vmem:[%s293_s1 + $0xa7] ss:$-30 sm:$0x30] %vm3_vm0, %v88_v11  }
  0x71   :  { %134 = vst.msk [vmem:[%s293_s1 + $0xe9] ss:$-30 sm:$0xc0] %vm3_vm0, %v88_v11  }
  0x74   :  { %v12_v12 = vpop.permute.xlu0 %11  }
  0x75   :  { %v31_v13 = vpop.permute.xlu1 %30   ;;  %107 = vst.msk [vmem:[%s293_s1 + $0x1] ss:$36 sm:$0x3] %vm3_vm0, %v12_v12  }
  0x76   :  { %108 = vst.msk [vmem:[%s293_s1 - $0x41] ss:$36 sm:$0xc] %vm3_vm0, %v12_v12  }
  0x77   :  { %109 = vst.msk [vmem:[%s293_s1 - $0x83] ss:$36 sm:$0x30] %vm3_vm0, %v12_v12  }
  0x78   :  { %110 = vst.msk [vmem:[%s293_s1 - $0x11] ss:$6 sm:$0xc0] %vm3_vm0, %v12_v12  }
  0x79   :  { %113 = vst.msk [vmem:[%s293_s1 + $0x20] ss:$-30 sm:$0x3] %vm3_vm0, %v31_v13  }
  0x7a   :  { %114 = vst.msk [vmem:[%s293_s1 + $0x62] ss:$-30 sm:$0xc] %vm3_vm0, %v31_v13  }
  0x7b   :  { %115 = vst.msk [vmem:[%s293_s1 + $0xa4] ss:$-30 sm:$0x30] %vm3_vm0, %v31_v13  }
  0x7c   :  { %116 = vst.msk [vmem:[%s293_s1 + $0xe6] ss:$-30 sm:$0xc0] %vm3_vm0, %v31_v13   ;;  %v25_v14 = vpop.permute.xlu0 %24  }
  0x7d   :  { %v44_v15 = vpop.permute.xlu1 %43   ;;  %112 = vst.msk [vmem:[%s293_s1 + $0x1f] sm:$0x1] %vm3_vm0, %v25_v14  }
  0x7e   :  { %118 = vst.msk [vmem:[%s293_s1 + $0x1a] sm:$0x1] %vm3_vm0, %v44_v15  }
  0x84   :  { %v69_v16 = vpop.permute.xlu0 %68  }
  0x85   :  { %v82_v17 = vpop.permute.xlu1 %81   ;;  %125 = vst.msk [vmem:[%s293_s1 + $0x22] ss:$-30 sm:$0x3] %vm3_vm0, %v69_v16  }
  0x86   :  { %126 = vst.msk [vmem:[%s293_s1 + $0x64] ss:$-30 sm:$0xc] %vm3_vm0, %v69_v16  }
  0x87   :  { %127 = vst.msk [vmem:[%s293_s1 + $0xa6] ss:$-30 sm:$0x30] %vm3_vm0, %v69_v16  }
  0x88   :  { %128 = vst.msk [vmem:[%s293_s1 + $0xe8] ss:$-30 sm:$0xc0] %vm3_vm0, %v69_v16  }
  0x89   :  { %130 = vst.msk [vmem:[%s293_s1 + $0x1c] sm:$0x1] %vm3_vm0, %v82_v17  }
  0x8c   :  { %v101_v18 = vpop.permute.xlu0 %100  }
  0x8d   :  { %136 = vst.msk [vmem:[%s293_s1 + $0x1d] sm:$0x1] %vm3_vm0, %v101_v18  }

// kernel: model_forward.2
= control target key start
LH: loop header
LB: loop body
LE: loop exit
PB: predicated region body
PF: predicated region fallthrough
CT: control target
= control target key end

     0   :  { %s681_s12 = smov 0   ;;  %s803_s0 = inlined_call_operand.vmem [shape: f32[2,12,156], index: 0, kind: input, shape index: {}]   ;;  %s804_s1 = inlined_call_operand.vmem [shape: f32[54,108], index: 1, kind: input, shape index: {}]   ;;  %s805_s2 = inlined_call_operand.vmem [shape: f32[54,1], index: 2, kind: input, shape index: {}]   ;;  %s806_s3 = inlined_call_operand.vmem [shape: f32[2,54,128], index: 3, kind: output, shape index: {}]  }
   0x1 LB: > { %s562_s13 = sadd.s32 4294967295, %s650_s12   ;;  %p566_p0 = scmp.ge.s32.totalorder %s650_s12, 1  ;;  %s650_s12 = sphi %s681_s12, %s13_s12  }
   0x2   : > { %p137_p1 = scmp.lt.s32.totalorder %s650_s12, 3 }
   0x4   : > { %p138_p2 = pnand %p566_p0, %p137_p1 }
   0x5   : > { %p161_p3 = scmp.lt.s32.totalorder (!%p138_p2), %s562_s13, 1  ;;  %s652_s18 = smov (!%p138_p2), 127  }
   0x6   : > { %141 = sbr.rel (%p138_p2) target bundleno = 365 (0x16d), region = 32  ;;  %s653_s19 = smov (!%p138_p2), 126  }
   0x7   : > { %s654_s20 = smov (!%p138_p2), 116   ;;  %s655_s21 = smov (!%p138_p2), 115  }
   0x8   : > { %s656_s22 = smov (!%p138_p2), 114   ;;  %s657_s23 = smov (!%p138_p2), 104  }
   0x9   : > { %s658_s24 = smov (!%p138_p2), 103   ;;  %s659_s25 = smov (!%p138_p2), 102  }
   0xb   : > { %s808_s13 = smov (!%p161_p3, %s562_s13), 1  ;;  %vm444_vm0 = vcmask 1043456   ;;  %vm325_vm1 = vcmask 1031168   ;;  %vm348_vm2 = vcmask 1039360   ;;  %vm302_vm3 = vcmask 949248  }
   0xc   : > { %s580_s14 = sshll.u32 %s808_s13, 5  ;;  %vm279_vm4 = vcmask 941056   ;;  %vm256_vm5 = vcmask 932864   ;;  %vm233_vm6 = vcmask 850944   ;;  %v660_v62 = vmov 0   ;;  %s623_s29 = smul.u32 56, %s808_s13 }
   0xd   : > { %s695_s17 = scalar_lea.vmem %s803_s0, %s580_s14  ;;  %643 = vset.pattern.permute.xlu1 %v660_v62  ;;  %642 = vset.pattern.permute.xlu0 %v660_v62  ;;  %vm210_vm7 = vcmask 842752   ;;  %vm187_vm8 = vcmask 834560   ;;  %vm422_vm9 = vcmask 883712  }
   0xe   : > { %v334_v0 = vld [vmem:[%s695_s17 + $0x10] sm:$0xf]  ;;  %v699_v1 = vld [vmem:[%s695_s17] sm:$0xff]  ;;  %v335_v3 = vld [vmem:[%s695_s17 + $0x18] sm:$0xf]  ;;  %641 = vset.pattern.permute.xlu2 %v660_v62  ;;  %s791_s5 = scalar_lea.vmem %s806_s3, %s623_s29 }
   0xf   : > { %344 = vrot.lane.b32.xlu1 %v334_v0, %s652_s18  ;;  %340 = vrot.lane.b32.xlu0 %v699_v1, %s652_s18  ;;  %v311_v2 = vld [vmem:[%s695_s17 + $0x10] sm:$0xf]  ;;  %v333_v4 = vld [vmem:[%s695_s17 + $0x8] sm:$0xff] }
  0x10   : > { %321 = vrot.lane.b32.xlu2 %v311_v2, %s653_s19  ;;  %v312_v5 = vld [vmem:[%s695_s17 + $0x18] sm:$0xf]  ;;  %v288_v6 = vld [vmem:[%s695_s17 + $0x10] sm:$0xf] }
  0x11   : > { %v289_v7 = vld [vmem:[%s695_s17 + $0x18] sm:$0xf]  ;;  %v265_v9 = vld [vmem:[%s695_s17 + $0x10] sm:$0xf] }
  0x12   : > { %v266_v8 = vld [vmem:[%s695_s17 + $0x18] sm:$0xf]  ;;  %v242_v10 = vld [vmem:[%s695_s17 + $0x10] sm:$0xf] }
  0x13   : > { %v243_v11 = vld [vmem:[%s695_s17 + $0x18] sm:$0xf]  ;;  %v219_v12 = vld [vmem:[%s695_s17 + $0x10] sm:$0xf] }
  0x14   : > { %v220_v13 = vld [vmem:[%s695_s17 + $0x18] sm:$0xf]  ;;  %v196_v14 = vld [vmem:[%s695_s17 + $0x10] sm:$0xf] }
  0x15   : > { %v197_v15 = vld [vmem:[%s695_s17 + $0x18] sm:$0xf]  ;;  %v173_v16 = vld [vmem:[%s695_s17 + $0x10] sm:$0xf] }
  0x16   : > { %v174_v17 = vld [vmem:[%s695_s17 + $0x18] sm:$0xf]  ;;  %v356_v18 = vld [vmem:[%s695_s17 + $0x10] sm:$0xf] }
  0x17   : > { %346 = vrot.lane.b32.xlu1 %v335_v3, %s652_s18  ;;  %342 = vrot.lane.b32.xlu0 %v333_v4, %s652_s18  ;;  %358 = vst [vmem:[#allocation2 + $0x68] sm:$0xf] %v356_v18  ;;  %v382_v3 = vld [vmem:[%s805_s2 + $0x10] sm:$0xff] }
  0x18   : > { %323 = vrot.lane.b32.xlu2 %v312_v5, %s653_s19  ;;  %v380_v5 = vld [vmem:[%s805_s2] sm:$0xff] }
  0x1e   : > { %v379_v20 = vld [vmem:[#allocation2 + $0x68] sm:$0xf] }
  0x1f   : > { %319 = vrot.lane.b32.xlu1 %v333_v4, %s653_s19  ;;  %317 = vrot.lane.b32.xlu0 %v699_v1, %s653_s19 }
  0x20   : > { %294 = vrot.lane.b32.xlu2 %v699_v1, %s654_s20  ;;  %570 = vmatpush.msk.msra.mxu0 %vm444_vm0, %v379_v20 }
  0x21   : > { %581 = vmatpush.msk.msra.mxu1 %vm444_vm0, %v379_v20  ;;  %582 = vmatpush.msk.msra.mxu2 %vm444_vm0, %v379_v20 }
  0x22   : > { %583 = vmatpush.msk.msra.mxu3 %vm444_vm0, %v379_v20  ;;  %451 = vmatpush.msra.mxu0 %v699_v1  ;;  %v362_v20 = vld [vmem:[%s804_s1 + $0x18] sm:$0xff] }
  0x23   : > { %584 = vmatpush.msra.mxu1 %v699_v1  ;;  %585 = vmatpush.msra.mxu2 %v699_v1 }
  0x24   : > { %586 = vmatpush.msra.mxu3 %v699_v1 }
  0x27   : > { %298 = vrot.lane.b32.xlu1 %v288_v6, %s654_s20  ;;  %296 = vrot.lane.b32.xlu0 %v333_v4, %s654_s20 }
  0x28   : > { %300 = vrot.lane.b32.xlu2 %v289_v7, %s654_s20 }
  0x2f   : > { %277 = vrot.lane.b32.xlu1 %v266_v8, %s655_s21  ;;  %275 = vrot.lane.b32.xlu0 %v265_v9, %s655_s21 }
  0x30   : > { %271 = vrot.lane.b32.xlu2 %v699_v1, %s655_s21 }
  0x37   : > { %273 = vrot.lane.b32.xlu0 %v333_v4, %s655_s21  ;;  %248 = vrot.lane.b32.xlu1 %v699_v1, %s656_s22 }
  0x38   : > { %250 = vrot.lane.b32.xlu2 %v333_v4, %s656_s22 }
  0x3f   : > { %252 = vrot.lane.b32.xlu0 %v242_v10, %s656_s22  ;;  %254 = vrot.lane.b32.xlu1 %v243_v11, %s656_s22  ;;  %v384_v11 = vld [vmem:[%s805_s2 + $0x20] sm:$0xff] }
  0x40   : > { %229 = vrot.lane.b32.xlu2 %v219_v12, %s657_s23  ;;  %v386_v12 = vld [vmem:[%s805_s2 + $0x30] sm:$0x3f] }
  0x47   : > { %231 = vrot.lane.b32.xlu0 %v220_v13, %s657_s23  ;;  %225 = vrot.lane.b32.xlu1 %v699_v1, %s657_s23  ;;  %v383_v13 = vld [vmem:[%s805_s2 + $0x18] sm:$0xff] }
  0x48   : > { %227 = vrot.lane.b32.xlu2 %v333_v4, %s657_s23 }
  0x4f   : > { %204 = vrot.lane.b32.xlu1 %v333_v4, %s658_s24  ;;  %202 = vrot.lane.b32.xlu0 %v699_v1, %s658_s24 }
  0x50   : > { %206 = vrot.lane.b32.xlu2 %v196_v14, %s658_s24 }
  0x57   : > { %208 = vrot.lane.b32.xlu0 %v197_v15, %s658_s24  ;;  %183 = vrot.lane.b32.xlu1 %v173_v16, %s659_s25 }
  0x58   : > { %185 = vrot.lane.b32.xlu2 %v174_v17, %s659_s25 }
  0x5f   : > { %181 = vrot.lane.b32.xlu1 %v333_v4, %s659_s25  ;;  %179 = vrot.lane.b32.xlu0 %v699_v1, %s659_s25  ;;  %v381_v4 = vld [vmem:[%s805_s2 + $0x8] sm:$0xff] }
  0x60   : > { %389 = vperm.xlu2 %641, %v380_v5  }
  0x67   : > { %399 = vperm.xlu1 %643, %v382_v3   ;;  %394 = vperm.xlu0 %642, %v381_v4  }
  0x68   : > { %404 = vperm.xlu2 %641, %v383_v13  }
  0x6a   : > { %v322_v19 = vpop.permute.xlu2 %321 }
  0x6f   : > { %409 = vperm.xlu1 %643, %v384_v11   ;;  %419 = vperm.xlu0 %642, %v386_v12  }
  0x72   : > { %v324_v21 = vpop.permute.xlu2 %323 }
  0x73   : > { %v327_v22 = vsel %vm325_vm1, %v322_v19, %v324_v21  ;;  %v359_v19 = vld [vmem:[%s804_s1] sm:$0xff]  ;;  %v364_v21 = vld [vmem:[%s804_s1 + $0x28] sm:$0xff] }
  0x74   : > { %331 = vst [vmem:[#allocation2 + $0x50] sm:$0xf] %v327_v22  ;;  %v361_v22 = vld [vmem:[%s804_s1 + $0x10] sm:$0xff] }
  0x7a   : > { %v295_v23 = vpop.permute.xlu2 %294 }
  0x81   : > { %v345_v24 = vpop.permute.xlu1 %344  ;;  %v341_v25 = vpop.permute.xlu0 %340 }
  0x82   : > { %v301_v30 = vpop.permute.xlu2 %300 }
  0x89   : > { %v347_v26 = vpop.permute.xlu1 %346  ;;  %v343_v27 = vpop.permute.xlu0 %342 }
  0x8a   : > { %v350_v28 = vsel %vm348_vm2, %v345_v24, %v347_v26  ;;  %v349_v29 = vsel %vm348_vm2, %v341_v25, %v343_v27  ;;  %v272_v35 = vpop.permute.xlu2 %271  ;;  %v360_v24 = vld [vmem:[%s804_s1 + $0x8] sm:$0xff]  ;;  %v363_v25 = vld [vmem:[%s804_s1 + $0x20] sm:$0xff]  ;;  %v365_v26 = vld [vmem:[%s804_s1 + $0x30] sm:$0x3f] }
  0x8b   : > { %354 = vst [vmem:[#allocation2 + $0x5c] sm:$0xf] %v350_v28 }
  0x8c   : > { %353 = vst [vmem:[#allocation2 + $0x54] sm:$0xff] %v349_v29 }
  0x91   : > { %v320_v31 = vpop.permute.xlu1 %319  ;;  %v318_v32 = vpop.permute.xlu0 %317 }
  0x92   : > { %v326_v33 = vsel %vm325_vm1, %v318_v32, %v320_v31  ;;  %v251_v41 = vpop.permute.xlu2 %250 }
  0x93   : > { %v377_v34 = vld [vmem:[#allocation2 + $0x58] sm:$0xff]  ;;  %v376_v36 = vld [vmem:[#allocation2 + $0x50] sm:$0xff] }
  0x94   : > { %452 = vmatpush.msra.mxu0 %v377_v34  ;;  %587 = vmatpush.msra.mxu1 %v377_v34 }
  0x95   : > { %588 = vmatpush.msra.mxu2 %v377_v34  ;;  %589 = vmatpush.msra.mxu3 %v377_v34 }
  0x96   : > { %453 = vmatpush.msra.mxu0 %v376_v36  ;;  %590 = vmatpush.msra.mxu1 %v376_v36 }
  0x97   : > { %591 = vmatpush.msra.mxu2 %v376_v36  ;;  %592 = vmatpush.msra.mxu3 %v376_v36 }
  0x98   : > { %454 = vmatpush.msra.mxu0 %v326_v33  ;;  %593 = vmatpush.msra.mxu1 %v326_v33 }
  0x99   : > { %v299_v37 = vpop.permute.xlu1 %298  ;;  %v297_v38 = vpop.permute.xlu0 %296  ;;  %594 = vmatpush.msra.mxu2 %v326_v33  ;;  %595 = vmatpush.msra.mxu3 %v326_v33 }
  0x9a   : > { %v303_v39 = vsel %vm302_vm3, %v295_v23, %v297_v38  ;;  %v304_v40 = vsel %vm302_vm3, %v299_v37, %v301_v30  ;;  %v230_v46 = vpop.permute.xlu2 %229  ;;  %v385_v23 = vld [vmem:[%s805_s2 + $0x28] sm:$0xff] }
  0x9b   : > { %307 = vst [vmem:[#allocation2 + $0x3c] sm:$0xff] %v303_v39  ;;  %414 = vperm.xlu2 %641, %v385_v23  }
  0x9c   : > { %308 = vst [vmem:[#allocation2 + $0x44] sm:$0xf] %v304_v40 }
  0xa1   : > { %v278_v42 = vpop.permute.xlu1 %277  ;;  %v276_v43 = vpop.permute.xlu0 %275 }
  0xa2   : > { %v281_v44 = vsel %vm279_vm4, %v276_v43, %v278_v42  ;;  %v228_v55 = vpop.permute.xlu2 %227 }
  0xa3   : > { %285 = vst [vmem:[#allocation2 + $0x38] sm:$0xf] %v281_v44  ;;  %v374_v45 = vld [vmem:[#allocation2 + $0x40] sm:$0xff] }
  0xa4   : > { %455 = vmatpush.msra.mxu0 %v374_v45  ;;  %596 = vmatpush.msra.mxu1 %v374_v45 }
  0xa5   : > { %597 = vmatpush.msra.mxu2 %v374_v45  ;;  %598 = vmatpush.msra.mxu3 %v374_v45 }
  0xa9   : > { %v274_v47 = vpop.permute.xlu0 %273  ;;  %v249_v48 = vpop.permute.xlu1 %248 }
  0xaa   : > { %v280_v49 = vsel %vm279_vm4, %v272_v35, %v274_v47  ;;  %v257_v50 = vsel %vm256_vm5, %v249_v48, %v251_v41  ;;  %v373_v51 = vld [vmem:[#allocation2 + $0x38] sm:$0xff]  ;;  %v207_v61 = vpop.permute.xlu2 %206 }
  0xab   : > { %456 = vmatpush.msra.mxu0 %v373_v51  ;;  %599 = vmatpush.msra.mxu1 %v373_v51  ;;  %261 = vst [vmem:[#allocation2 + $0x24] sm:$0xff] %v257_v50 }
  0xac   : > { %600 = vmatpush.msra.mxu2 %v373_v51  ;;  %601 = vmatpush.msra.mxu3 %v373_v51 }
  0xad   : > { %457 = vmatpush.msra.mxu0 %v280_v49  ;;  %602 = vmatpush.msra.mxu1 %v280_v49 }
  0xae   : > { %603 = vmatpush.msra.mxu2 %v280_v49  ;;  %604 = vmatpush.msra.mxu3 %v280_v49 }
  0xb1   : > { %v253_v52 = vpop.permute.xlu0 %252  ;;  %v255_v53 = vpop.permute.xlu1 %254 }
  0xb2   : > { %v258_v54 = vsel %vm256_vm5, %v253_v52, %v255_v53  ;;  %v186_v6 = vpop.permute.xlu2 %185 }
  0xb3   : > { %262 = vst [vmem:[#allocation2 + $0x2c] sm:$0xf] %v258_v54 }
  0xb9   : > { %v232_v56 = vpop.permute.xlu0 %231  ;;  %v226_v57 = vpop.permute.xlu1 %225 }
  0xba   : > { %v235_v58 = vsel %vm233_vm6, %v230_v46, %v232_v56  ;;  %v234_v59 = vsel %vm233_vm6, %v226_v57, %v228_v55  ;;  %v371_v60 = vld [vmem:[#allocation2 + $0x28] sm:$0xff]  ;;  %v390_v27 = vpop.permute.xlu2 %389 }
  0xbb   : > { %239 = vst [vmem:[#allocation2 + $0x20] sm:$0xf] %v235_v58  ;;  %458 = vmatpush.msra.mxu0 %v371_v60  ;;  %605 = vmatpush.msra.mxu1 %v371_v60 }
  0xbc   : > { %606 = vmatpush.msra.mxu2 %v371_v60  ;;  %607 = vmatpush.msra.mxu3 %v371_v60 }
  0xc1   : > { %v205_v63 = vpop.permute.xlu1 %204  ;;  %v203_v0 = vpop.permute.xlu0 %202 }
  0xc2   : > { %v211_v1 = vsel %vm210_vm7, %v203_v0, %v205_v63  ;;  %v370_v2 = vld [vmem:[#allocation2 + $0x20] sm:$0xff]  ;;  %v405_v28 = vpop.permute.xlu2 %404 }
  0xc3   : > { %215 = vst [vmem:[#allocation2 + $0xc] sm:$0xff] %v211_v1  ;;  %459 = vmatpush.msra.mxu0 %v370_v2  ;;  %608 = vmatpush.msra.mxu1 %v370_v2 }
  0xc4   : > { %609 = vmatpush.msra.mxu2 %v370_v2  ;;  %610 = vmatpush.msra.mxu3 %v370_v2 }
  0xc5   : > { %460 = vmatpush.msra.mxu0 %v234_v59  ;;  %611 = vmatpush.msra.mxu1 %v234_v59 }
  0xc6   : > { %612 = vmatpush.msra.mxu2 %v234_v59  ;;  %613 = vmatpush.msra.mxu3 %v234_v59 }
  0xc9   : > { %v209_v7 = vpop.permute.xlu0 %208  ;;  %v184_v8 = vpop.permute.xlu1 %183 }
  0xca   : > { %v212_v9 = vsel %vm210_vm7, %v207_v61, %v209_v7  ;;  %v189_v10 = vsel %vm187_vm8, %v184_v8, %v186_v6 }
  0xcb   : > { %216 = vst [vmem:[#allocation2 + $0x14] sm:$0xf] %v212_v9 }
  0xcc   : > { %193 = vst [vmem:[#allocation2 + $0x8] sm:$0xf] %v189_v10 }
  0xd1   : > { %v182_v14 = vpop.permute.xlu1 %181  ;;  %v180_v15 = vpop.permute.xlu0 %179 }
  0xd2   : > { %v188_v16 = vsel %vm187_vm8, %v180_v15, %v182_v14  ;;  %v368_v17 = vld [vmem:[#allocation2 + $0x10] sm:$0xff] }
  0xd3   : > { %461 = vmatpush.msra.mxu0 %v368_v17  ;;  %614 = vmatpush.msra.mxu1 %v368_v17  ;;  %v367_v18 = vld [vmem:[#allocation2 + $0x8] sm:$0xff] }
  0xd4   : > { %615 = vmatpush.msra.mxu2 %v368_v17  ;;  %616 = vmatpush.msra.mxu3 %v368_v17 }
  0xd5   : > { %462 = vmatpush.msra.mxu0 %v367_v18  ;;  %617 = vmatpush.msra.mxu1 %v367_v18 }
  0xd6   : > { %618 = vmatpush.msra.mxu2 %v367_v18  ;;  %619 = vmatpush.msra.mxu3 %v367_v18 }
  0xd7   : > { %463 = vmatpush.msra.mxu0 %v188_v16  ;;  %620 = vmatpush.msra.mxu1 %v188_v16 }
  0xd8   : > { %621 = vmatpush.msra.mxu2 %v188_v16  ;;  %622 = vmatpush.msra.mxu3 %v188_v16 }
  0xd9   : > { %571 = vmatmul.msk.f32.vlgmr.msra.gmra.mxu0 %vm422_vm9, %v359_v19  ;;  %574 = vmatmul.msk.f32.vlgmr.msra.gmra.mxu2 %vm422_vm9, %v362_v20  ;;  %v400_v30 = vpop.permute.xlu1 %399  ;;  %v395_v36 = vpop.permute.xlu0 %394 }
  0xda   : > { %576 = vmatmul.msk.f32.vlgmr.msra.gmra.mxu3 %vm422_vm9, %v364_v21  ;;  %573 = vmatmul.msk.f32.vlgmr.msra.gmra.mxu1 %vm422_vm9, %v361_v22 }
  0xe1   : > { %572 = vmatmul.msk.f32.gmra.mxu0 %vm422_vm9, %v360_v24  ;;  %575 = vmatmul.msk.f32.gmra.mxu2 %vm422_vm9, %v363_v25  ;;  %v410_v52 = vpop.permute.xlu1 %409  ;;  %v420_v54 = vpop.permute.xlu0 %419 }
  0xe2   : > { %577 = vmatmul.msk.f32.gmra.mxu3 %vm422_vm9, %v365_v26 }
  0xf5   : > { %v415_v40 = vpop.permute.xlu2 %414 }
 0x156   : > { %v465_v29 = vpop.f32.mrf.mxu0 }
 0x157   : > { %v466_v31 = vadd.f32 %v465_v29, %v390_v27  ;;  %v471_v32 = vpop.f32.mrf.mxu1 }
 0x158   : > { %v472_v33 = vadd.f32 %v471_v32, %v400_v30 }
 0x159   : > { %v486_v34 = vmul.f32 0.5, %v466_v31 }
 0x15a   : > { %v488_v35 = vmul.f32 0.5, %v472_v33 }
 0x15b   : > { %v493_v37 = vmax.f32 %v466_v31, %v486_v34 }
 0x15c   : > { %v495_v38 = vmax.f32 %v472_v33, %v488_v35  ;;  %v474_v39 = vpop.f32.mrf.mxu2 }
 0x15d   : > { %500 = vst [vmem:[%s791_s5] sm:$0xff] %v493_v37  ;;  %v475_v41 = vadd.f32 %v474_v39, %v405_v28  ;;  %v480_v42 = vpop.f32.mrf.mxu3 }
 0x15e   : > { %502 = vst [vmem:[%s791_s5 + $0x10] sm:$0xff] %v495_v38  ;;  %v481_v43 = vadd.f32 %v480_v42, %v415_v40  ;;  %v468_v44 = vpop.f32.mrf.mxu0 }
 0x15f   : > { %v489_v45 = vmul.f32 0.5, %v475_v41  ;;  %v469_v46 = vadd.f32 %v468_v44, %v395_v36 }
 0x160   : > { %v491_v47 = vmul.f32 0.5, %v481_v43 }
 0x161   : > { %v496_v48 = vmax.f32 %v475_v41, %v489_v45  ;;  %v487_v49 = vmul.f32 0.5, %v469_v46 }
 0x162   : > { %v498_v50 = vmax.f32 %v481_v43, %v491_v47 }
 0x163   : > { %503 = vst [vmem:[%s791_s5 + $0x18] sm:$0xff] %v496_v48  ;;  %v494_v51 = vmax.f32 %v469_v46, %v487_v49 }
 0x164   : > { %505 = vst [vmem:[%s791_s5 + $0x28] sm:$0xff] %v498_v50  ;;  %v477_v53 = vpop.f32.mrf.mxu2 }
 0x165   : > { %501 = vst [vmem:[%s791_s5 + $0x8] sm:$0xff] %v494_v51  ;;  %v478_v55 = vadd.f32 %v477_v53, %v410_v52  ;;  %v483_v56 = vpop.f32.mrf.mxu3 }
 0x166   : > { %v484_v57 = vadd.f32 %v483_v56, %v420_v54 }
 0x167   : > { %v490_v58 = vmul.f32 0.5, %v478_v55 }
 0x168   : > { %v492_v59 = vmul.f32 0.5, %v484_v57 }
 0x169   : > { %v497_v60 = vmax.f32 %v478_v55, %v490_v58 }
 0x16a   : > { %v499_v61 = vmax.f32 %v484_v57, %v492_v59 }
 0x16b   : > { %504 = vst [vmem:[%s791_s5 + $0x20] sm:$0xff] %v497_v60 }
 0x16c   : > { %506 = vst [vmem:[%s791_s5 + $0x30] sm:$0x3f] %v499_v61 }
 0x16d PF: > { %s13_s12 = sadd.s32 1, %s650_s12  }
 0x16e   : > { %p10_p4 = scmp.ge.s32.totalorder %s13_s12, 4  }
 0x170   :  { %12 = sbr.rel (!%p10_p4) target bundleno = 1 (0x1), region = 62 }

// kernel: model_forward.3
= control target key start
LH: loop header
LB: loop body
LE: loop exit
PB: predicated region body
PF: predicated region fallthrough
CT: control target
= control target key end

     0   :  { %s1242_s12 = smov 0   ;;  %s1657_s0 = inlined_call_operand.vmem [shape: f32[2,6,1120], index: 0, kind: input, shape index: {}]   ;;  %s1658_s1 = inlined_call_operand.vmem [shape: f32[9,54], index: 1, kind: input, shape index: {}]   ;;  %s1659_s2 = inlined_call_operand.vmem [shape: f32[9,1], index: 2, kind: input, shape index: {}]   ;;  %s1660_s3 = inlined_call_operand.vmem [shape: f32[2,9,1024], index: 3, kind: output, shape index: {}]  }
   0x1 LB: > { %s1150_s13 = sadd.s32 4294967295, %s1211_s12   ;;  %p1154_p0 = scmp.ge.s32.totalorder %s1211_s12, 1  ;;  %s1211_s12 = sphi %s1242_s12, %s13_s12  }
   0x2   : > { %p137_p1 = scmp.lt.s32.totalorder %s1211_s12, 3 }
   0x4   : > { %p138_p2 = pnand %p1154_p0, %p137_p1 }
   0x5   : > { %p161_p3 = scmp.lt.s32.totalorder (!%p138_p2), %s1150_s13, 1  ;;  %s1213_s18 = smov (!%p138_p2), 62  }
   0x6   : > { %141 = sbr.rel (%p138_p2) target bundleno = 475 (0x1db), region = 32  ;;  %s1214_s19 = smov (!%p138_p2), 126  }
   0x7   : > { %s1215_s20 = smov (!%p138_p2), 127   ;;  %s1216_s21 = smov (!%p138_p2), 96  }
   0x8   : > { %s1217_s22 = smov (!%p138_p2), 95   ;;  %s1218_s23 = smov (!%p138_p2), 64  }
   0x9   : > { %s1219_s24 = smov (!%p138_p2), 94   ;;  %s1220_s25 = smov (!%p138_p2), 63  }
   0xb   : > { %s1662_s13 = smov (!%p161_p3, %s1150_s13), 1  ;;  %vm642_vm0 = vcmask 1031168   ;;  %vm838_vm1 = vcmask 1045504   ;;  %vm207_vm2 = vcmask 506880   ;;  %vm720_vm3 = vcmask 1039360  }
   0xc   : > { %s1185_s14 = smul.u32 72, %s1662_s13  ;;  %vm564_vm4 = vcmask 785408   ;;  %vm494_vm5 = vcmask 777216   ;;  %vm355_vm6 = vcmask 523264   ;;  %vm433_vm7 = vcmask 769024   ;;  %s1184_s7 = sshll.u32 %s1662_s13, 7 }
   0xd   : > { %vm277_vm8 = vcmask 515072   ;;  %vm831_vm9 = vcmask 441344   ;;  %s1636_s10 = scalar_lea.vmem %s1660_s3, %s1184_s7 }
   0xe   : > { %s1256_s17 = scalar_lea.vmem %s1657_s0, %s1185_s14 }
   0xf   : > { %v173_v0 = vld [vmem:[%s1256_s17 + $0x10] sm:$0x3f]  ;;  %v171_v1 = vld [vmem:[%s1256_s17] sm:$0x3f]  ;;  %v600_v2 = vld [vmem:[%s1256_s17 + $0x18] sm:$0x3f] }
  0x10   : > { %193 = vrot.lane.b32.xlu1 %v173_v0, %s1213_s18  ;;  %189 = vrot.lane.b32.xlu0 %v171_v1, %s1213_s18  ;;  %v618_v3 = vrot.slane %v600_v2, 4  ;;  %v599_v4 = vld [vmem:[%s1256_s17 + $0x10] sm:$0x3f]  ;;  %v601_v5 = vld [vmem:[%s1256_s17 + $0x20] sm:$0x3f] }
  0x11   : > { %v617_v6 = vrot.slane %v599_v4, 4  ;;  %v172_v7 = vld [vmem:[%s1256_s17 + $0x8] sm:$0x3f]  ;;  %v619_v8 = vrot.slane %v601_v5, 4  ;;  %v678_v9 = vld [vmem:[%s1256_s17 + $0x18] sm:$0x3f] }
  0x12   : > { %630 = vrot.lane.b32.xlu2 %v618_v3, %s1214_s19  ;;  %v677_v10 = vld [vmem:[%s1256_s17 + $0x10] sm:$0x3f]  ;;  %v679_v11 = vld [vmem:[%s1256_s17 + $0x20] sm:$0x3f]  ;;  %v696_v12 = vrot.slane %v678_v9, 6 }
  0x13   : > { %v695_v13 = vrot.slane %v677_v10, 6  ;;  %v697_v14 = vrot.slane %v679_v11, 6  ;;  %v522_v15 = vld [vmem:[%s1256_s17 + $0x18] sm:$0x3f]  ;;  %v521_v16 = vld [vmem:[%s1256_s17 + $0x10] sm:$0x3f] }
  0x14   : > { %v523_v17 = vld [vmem:[%s1256_s17 + $0x20] sm:$0x3f]  ;;  %v540_v18 = vrot.slane %v522_v15, 2  ;;  %v539_v19 = vrot.slane %v521_v16, 2  ;;  %v461_v21 = vld [vmem:[%s1256_s17 + $0x18] sm:$0x3f] }
  0x15   : > { %v541_v20 = vrot.slane %v523_v17, 2  ;;  %v460_v22 = vld [vmem:[%s1256_s17 + $0x10] sm:$0x3f]  ;;  %v462_v23 = vld [vmem:[%s1256_s17 + $0x20] sm:$0x3f] }
  0x16   : > { %v313_v24 = vld [vmem:[%s1256_s17 + $0x18] sm:$0x3f]  ;;  %v312_v25 = vld [vmem:[%s1256_s17 + $0x10] sm:$0x3f]  ;;  %v314_v26 = vld [vmem:[%s1256_s17 + $0x20] sm:$0x3f] }
  0x17   : > { %v331_v27 = vrot.slane %v313_v24, 4  ;;  %v330_v28 = vrot.slane %v312_v25, 4  ;;  %v332_v29 = vrot.slane %v314_v26, 4  ;;  %v391_v30 = vld [vmem:[%s1256_s17 + $0x18] sm:$0x3f] }
  0x18   : > { %628 = vrot.lane.b32.xlu1 %v617_v6, %s1214_s19  ;;  %191 = vrot.lane.b32.xlu0 %v172_v7, %s1213_s18  ;;  %v390_v31 = vld [vmem:[%s1256_s17 + $0x10] sm:$0x3f]  ;;  %v392_v32 = vld [vmem:[%s1256_s17 + $0x20] sm:$0x3f]  ;;  %v409_v33 = vrot.slane %v391_v30, 6 }
  0x19   : > { %v408_v34 = vrot.slane %v390_v31, 6  ;;  %v410_v35 = vrot.slane %v392_v32, 6  ;;  %v598_v36 = vld [vmem:[%s1256_s17 + $0x8] sm:$0x3f]  ;;  %v597_v37 = vld [vmem:[%s1256_s17] sm:$0x3f] }
  0x1a   : > { %632 = vrot.lane.b32.xlu2 %v619_v8, %s1214_s19  ;;  %v675_v38 = vld [vmem:[%s1256_s17] sm:$0x3f]  ;;  %v616_v39 = vrot.slane %v598_v36, 4  ;;  %v615_v40 = vrot.slane %v597_v37, 4  ;;  %v234_v42 = vld [vmem:[%s1256_s17 + $0x10] sm:$0x3f] }
  0x1b   : > { %v693_v41 = vrot.slane %v675_v38, 6  ;;  %v676_v43 = vld [vmem:[%s1256_s17 + $0x8] sm:$0x3f]  ;;  %v235_v44 = vld [vmem:[%s1256_s17 + $0x18] sm:$0x3f]  ;;  %v252_v45 = vrot.slane %v234_v42, 2 }
  0x1c   : > { %v694_v46 = vrot.slane %v676_v43, 6  ;;  %v253_v47 = vrot.slane %v235_v44, 2  ;;  %v519_v48 = vld [vmem:[%s1256_s17] sm:$0x3f]  ;;  %v520_v50 = vld [vmem:[%s1256_s17 + $0x8] sm:$0x3f] }
  0x1d   : > { %v236_v49 = vld [vmem:[%s1256_s17 + $0x20] sm:$0x3f]  ;;  %v537_v51 = vrot.slane %v519_v48, 2  ;;  %v538_v53 = vrot.slane %v520_v50, 2  ;;  %v174_v55 = vld [vmem:[%s1256_s17 + $0x18] sm:$0x3f] }
  0x1e   : > { %v254_v52 = vrot.slane %v236_v49, 2  ;;  %v175_v54 = vld [vmem:[%s1256_s17 + $0x20] sm:$0x3f]  ;;  %v311_v58 = vld [vmem:[%s1256_s17 + $0x8] sm:$0x3f] }
  0x1f   : > { %v458_v56 = vld [vmem:[%s1256_s17] sm:$0x3f]  ;;  %v459_v60 = vld [vmem:[%s1256_s17 + $0x8] sm:$0x3f]  ;;  %v329_v61 = vrot.slane %v311_v58, 4 }
  0x20   : > { %708 = vrot.lane.b32.xlu1 %v696_v12, %s1215_s20  ;;  %706 = vrot.lane.b32.xlu0 %v695_v13, %s1215_s20  ;;  %v310_v57 = vld [vmem:[%s1256_s17] sm:$0x3f]  ;;  %v389_v62 = vld [vmem:[%s1256_s17 + $0x8] sm:$0x3f] }
  0x21   : > { %v328_v59 = vrot.slane %v310_v57, 4  ;;  %v388_v63 = vld [vmem:[%s1256_s17] sm:$0x3f]  ;;  %v407_v2 = vrot.slane %v389_v62, 6  ;;  %v603_v5 = vld [vmem:[%s1256_s17 + $0x30] sm:$0x3f] }
  0x22   : > { %710 = vrot.lane.b32.xlu2 %v697_v14, %s1215_s20  ;;  %v232_v0 = vld [vmem:[%s1256_s17] sm:$0x3f]  ;;  %v406_v3 = vrot.slane %v388_v63, 6  ;;  %v233_v6 = vld [vmem:[%s1256_s17 + $0x8] sm:$0x3f]  ;;  %v621_v9 = vrot.slane %v603_v5, 4 }
  0x23   : > { %v250_v4 = vrot.slane %v232_v0, 2  ;;  %v604_v7 = vld [vmem:[%s1256_s17 + $0x38] sm:$0x3f]  ;;  %v251_v10 = vrot.slane %v233_v6, 2  ;;  %v747_v11 = vld [vmem:[%s1256_s17 + $0x10] sm:$0x3f] }
  0x24   : > { %755 = vst [vmem:[#allocation2 + $0x88] sm:$0x3f] %v747_v11  ;;  %v748_v13 = vld [vmem:[%s1256_s17 + $0x18] sm:$0x3f]  ;;  %v622_v14 = vrot.slane %v604_v7, 4 }
  0x25   : > { %756 = vst [vmem:[#allocation2 + $0x170] sm:$0x3f] %v748_v13  ;;  %v681_v15 = vld [vmem:[%s1256_s17 + $0x30] sm:$0x3f]  ;;  %v605_v16 = vld [vmem:[%s1256_s17 + $0x40] sm:$0x3f] }
  0x26   : > { %v682_v17 = vld [vmem:[%s1256_s17 + $0x38] sm:$0x3f]  ;;  %v525_v24 = vld [vmem:[%s1256_s17 + $0x30] sm:$0x3f]  ;;  %v683_v25 = vld [vmem:[%s1256_s17 + $0x40] sm:$0x3f] }
  0x27   : > { %v543_v30 = vrot.slane %v525_v24, 2  ;;  %v701_v31 = vrot.slane %v683_v25, 6  ;;  %v465_v42 = vld [vmem:[%s1256_s17 + $0x38] sm:$0x3f]  ;;  %v316_v43 = vld [vmem:[%s1256_s17 + $0x30] sm:$0x3f] }
  0x28   : > { %552 = vrot.lane.b32.xlu1 %v540_v18, %s1216_s21  ;;  %550 = vrot.lane.b32.xlu0 %v539_v19, %s1216_s21  ;;  %v699_v19 = vrot.slane %v681_v15, 6  ;;  %v317_v48 = vld [vmem:[%s1256_s17 + $0x38] sm:$0x3f]  ;;  %v334_v50 = vrot.slane %v316_v43, 4  ;;  %v746_v15 = vld [vmem:[%s1256_s17 + $0x8] sm:$0x3f] }
  0x29   : > { %754 = vst [vmem:[#allocation2 + $0x38] sm:$0x3f] %v746_v15 }
  0x2a   : > { %554 = vrot.lane.b32.xlu2 %v541_v20, %s1216_s21  ;;  %v623_v20 = vrot.slane %v605_v16, 4 }
  0x30   : > { %482 = vrot.lane.b32.xlu1 %v461_v21, %s1217_s22  ;;  %480 = vrot.lane.b32.xlu0 %v460_v22, %s1217_s22  ;;  %v813_v21 = vld [vmem:[#allocation2 + $0x88] sm:$0x3f]  ;;  %v700_v22 = vrot.slane %v682_v17, 6 }
  0x31   : > { %1164 = vmatpush.msk.msra.mxu2 %vm838_vm1, %v813_v21 }
  0x32   : > { %484 = vrot.lane.b32.xlu2 %v462_v23, %s1217_s22  ;;  %v814_v23 = vld [vmem:[#allocation2 + $0x170] sm:$0x3f] }
  0x33   : > { %1167 = vmatpush.msk.msra.mxu3 %vm838_vm1, %v814_v23 }
  0x38   : > { %343 = vrot.lane.b32.xlu1 %v331_v27, %s1218_s23  ;;  %341 = vrot.lane.b32.xlu0 %v330_v28, %s1218_s23  ;;  %v526_v28 = vld [vmem:[%s1256_s17 + $0x38] sm:$0x3f] }
  0x39   : > { %v544_v32 = vrot.slane %v526_v28, 2 }
  0x3a   : > { %345 = vrot.lane.b32.xlu2 %v332_v29, %s1218_s23 }
  0x40   : > { %421 = vrot.lane.b32.xlu1 %v409_v33, %s1219_s24  ;;  %419 = vrot.lane.b32.xlu0 %v408_v34, %s1219_s24  ;;  %v527_v33 = vld [vmem:[%s1256_s17 + $0x40] sm:$0x3f] }
  0x42   : > { %423 = vrot.lane.b32.xlu2 %v410_v35, %s1219_s24 }
  0x48   : > { %626 = vrot.lane.b32.xlu1 %v616_v39, %s1214_s19  ;;  %624 = vrot.lane.b32.xlu0 %v615_v40, %s1214_s19  ;;  %v545_v40 = vrot.slane %v527_v33, 2 }
  0x4a   : > { %702 = vrot.lane.b32.xlu2 %v693_v41, %s1215_s20  ;;  %v464_v41 = vld [vmem:[%s1256_s17 + $0x30] sm:$0x3f] }
  0x50   : > { %263 = vrot.lane.b32.xlu1 %v252_v45, %s1220_s25  ;;  %704 = vrot.lane.b32.xlu0 %v694_v46, %s1215_s20 }
  0x52   : > { %265 = vrot.lane.b32.xlu2 %v253_v47, %s1220_s25 }
  0x58   : > { %546 = vrot.lane.b32.xlu1 %v537_v51, %s1216_s21  ;;  %267 = vrot.lane.b32.xlu0 %v254_v52, %s1220_s25  ;;  %v466_v51 = vld [vmem:[%s1256_s17 + $0x40] sm:$0x3f]  ;;  %v335_v52 = vrot.slane %v317_v48, 4  ;;  %v178_v48 = vld [vmem:[%s1256_s17 + $0x38] sm:$0x3f] }
  0x5a   : > { %548 = vrot.lane.b32.xlu2 %v538_v53, %s1216_s21  ;;  %v394_v53 = vld [vmem:[%s1256_s17 + $0x30] sm:$0x3f] }
  0x5b   : > { %v412_v63 = vrot.slane %v394_v53, 6 }
  0x60   : > { %197 = vrot.lane.b32.xlu1 %v175_v54, %s1213_s18  ;;  %195 = vrot.lane.b32.xlu0 %v174_v55, %s1213_s18  ;;  %v318_v54 = vld [vmem:[%s1256_s17 + $0x40] sm:$0x3f] }
  0x61   : > { %v336_v0 = vrot.slane %v318_v54, 4 }
  0x62   : > { %476 = vrot.lane.b32.xlu2 %v458_v56, %s1217_s22 }
  0x68   : > { %337 = vrot.lane.b32.xlu1 %v328_v59, %s1218_s23  ;;  %478 = vrot.lane.b32.xlu0 %v459_v60, %s1217_s22  ;;  %v395_v60 = vld [vmem:[%s1256_s17 + $0x38] sm:$0x3f] }
  0x6a   : > { %339 = vrot.lane.b32.xlu2 %v329_v61, %s1218_s23 }
  0x6c   : > { %v631_v1 = vpop.permute.xlu2 %630 }
  0x70   : > { %417 = vrot.lane.b32.xlu1 %v407_v2, %s1219_s24  ;;  %415 = vrot.lane.b32.xlu0 %v406_v3, %s1219_s24  ;;  %v602_v2 = vld [vmem:[%s1256_s17 + $0x28] sm:$0x3f]  ;;  %v396_v3 = vld [vmem:[%s1256_s17 + $0x40] sm:$0x3f] }
  0x71   : > { %v414_v13 = vrot.slane %v396_v3, 6 }
  0x72   : > { %259 = vrot.lane.b32.xlu2 %v250_v4, %s1220_s25 }
  0x74   : > { %v1339_v8 = vpop.permute.xlu2 %632 }
  0x75   : > { %v646_v12 = vsel %vm642_vm0, %v631_v1, %v1339_v8 }
  0x76   : > { %662 = vst [vmem:[#allocation2 + $0x8] sm:$0xf0] %v646_v12 }
  0x77   : > { %670 = vst [vmem:[#allocation2 + $0x20] sm:$0x3] %v646_v12 }
  0x78   : > { %636 = vrot.lane.b32.xlu1 %v621_v9, %s1214_s19  ;;  %261 = vrot.lane.b32.xlu0 %v251_v10, %s1220_s25  ;;  %v620_v9 = vrot.slane %v602_v2, 4  ;;  %v680_v10 = vld [vmem:[%s1256_s17 + $0x28] sm:$0x3f] }
  0x79   : > { %v698_v17 = vrot.slane %v680_v10, 6  ;;  %v176_v10 = vld [vmem:[%s1256_s17 + $0x28] sm:$0x3f] }
  0x7a   : > { %638 = vrot.lane.b32.xlu2 %v622_v14, %s1214_s19  ;;  %v745_v14 = vld [vmem:[%s1256_s17] sm:$0x3f] }
  0x7b   : > { %753 = vst [vmem:[#allocation2 + $0x128] sm:$0x3f] %v745_v14 }
  0x7c   : > { %v1351_v18 = vpop.permute.xlu2 %710 }
  0x80   : > { %714 = vrot.lane.b32.xlu1 %v699_v19, %s1215_s20  ;;  %640 = vrot.lane.b32.xlu0 %v623_v20, %s1214_s19  ;;  %v239_v19 = vld [vmem:[%s1256_s17 + $0x38] sm:$0x3f]  ;;  %v238_v20 = vld [vmem:[%s1256_s17 + $0x30] sm:$0x3f] }
  0x82   : > { %716 = vrot.lane.b32.xlu2 %v700_v22, %s1215_s20  ;;  %v1360_v26 = vpop.permute.xlu1 %193  ;;  %v190_v27 = vpop.permute.xlu0 %189  ;;  %v811_v33 = vld [vmem:[#allocation2 + $0x128] sm:$0x3f] }
  0x83   : > { %1158 = vmatpush.msk.msra.mxu0 %vm838_vm1, %v811_v33 }
  0x84   : > { %v1363_v29 = vpop.permute.xlu2 %554 }
  0x88   : > { %558 = vrot.lane.b32.xlu1 %v543_v30, %s1216_s21  ;;  %718 = vrot.lane.b32.xlu0 %v701_v31, %s1215_s20  ;;  %v257_v31 = vrot.slane %v239_v19, 2 }
  0x8a   : > { %560 = vrot.lane.b32.xlu2 %v544_v32, %s1216_s21  ;;  %v1369_v34 = vpop.permute.xlu1 %628  ;;  %v192_v35 = vpop.permute.xlu0 %191  ;;  %v256_v32 = vrot.slane %v238_v20, 2 }
  0x8b   : > { %v645_v36 = vsel %vm642_vm0, %v1369_v34, %v631_v1  ;;  %v208_v37 = vsel %vm207_vm2, %v190_v27, %v192_v35  ;;  %v209_v38 = vsel %vm207_vm2, %v192_v35, %v1360_v26  ;;  %v413_v1 = vrot.slane %v395_v60, 6  ;;  %v240_v27 = vld [vmem:[%s1256_s17 + $0x40] sm:$0x3f] }
  0x8c   : > { %661 = vst [vmem:[#allocation2 + $0x148] sm:$0xf0] %v645_v36  ;;  %v1376_v39 = vpop.permute.xlu2 %484  ;;  %v258_v35 = vrot.slane %v240_v27, 2 }
  0x8d   : > { %669 = vst [vmem:[#allocation2 + $0x160] sm:$0x3] %v645_v36  ;;  %v812_v36 = vld [vmem:[#allocation2 + $0x38] sm:$0x3f] }
  0x8e   : > { %224 = vst [vmem:[#allocation2 + $0xb0] sm:$0x3f] %v208_v37  ;;  %1161 = vmatpush.msk.msra.mxu1 %vm838_vm1, %v812_v36  ;;  %v524_v37 = vld [vmem:[%s1256_s17 + $0x28] sm:$0x3f] }
  0x8f   : > { %225 = vst [vmem:[#allocation2 + $0x1b0] sm:$0x3f] %v209_v38 }
  0x90   : > { %488 = vrot.lane.b32.xlu1 %v464_v41, %s1217_s22  ;;  %562 = vrot.lane.b32.xlu0 %v545_v40, %s1216_s21 }
  0x92   : > { %490 = vrot.lane.b32.xlu2 %v465_v42, %s1217_s22  ;;  %v709_v44 = vpop.permute.xlu1 %708  ;;  %v1384_v45 = vpop.permute.xlu0 %706 }
  0x93   : > { %v724_v46 = vsel %vm720_vm3, %v709_v44, %v1351_v18  ;;  %v723_v47 = vsel %vm720_vm3, %v1384_v45, %v709_v44  ;;  %v542_v44 = vrot.slane %v524_v37, 2 }
  0x94   : > { %740 = vst [vmem:[#allocation2 + $0x20] sm:$0xfc] %v724_v46  ;;  %v1391_v49 = vpop.permute.xlu2 %345 }
  0x95   : > { %739 = vst [vmem:[#allocation2 + $0x160] sm:$0xfc] %v723_v47  ;;  %v177_v47 = vld [vmem:[%s1256_s17 + $0x30] sm:$0x3f] }
  0x98   : > { %349 = vrot.lane.b32.xlu1 %v334_v50, %s1218_s23  ;;  %492 = vrot.lane.b32.xlu0 %v466_v51, %s1217_s22 }
  0x9a   : > { %351 = vrot.lane.b32.xlu2 %v335_v52, %s1218_s23  ;;  %v553_v55 = vpop.permute.xlu1 %552  ;;  %v1399_v56 = vpop.permute.xlu0 %550 }
  0x9b   : > { %v568_v57 = vsel %vm564_vm4, %v553_v55, %v1363_v29  ;;  %v567_v58 = vsel %vm564_vm4, %v1399_v56, %v553_v55  ;;  %v806_v59 = vld [vmem:[#allocation2 + $0x20] sm:$0xff]  ;;  %v315_v55 = vld [vmem:[%s1256_s17 + $0x28] sm:$0x3f] }
  0x9c   : > { %584 = vst [vmem:[#allocation2 + $0xb8] sm:$0xc0] %v568_v57  ;;  %v1406_v61 = vpop.permute.xlu2 %423  ;;  %v805_v62 = vld [vmem:[#allocation2 + $0x160] sm:$0xff]  ;;  %942 = vmatpush.msra.mxu3 %v806_v59  ;;  %v333_v60 = vrot.slane %v315_v55, 4 }
  0x9d   : > { %592 = vst [vmem:[#allocation2 + $0x8] sm:$0xf] %v568_v57  ;;  %919 = vmatpush.msra.mxu2 %v805_v62  ;;  %v179_v59 = vld [vmem:[%s1256_s17 + $0x40] sm:$0x3f]  ;;  %v393_v62 = vld [vmem:[%s1256_s17 + $0x28] sm:$0x3f] }
  0x9e   : > { %583 = vst [vmem:[#allocation2 + $0x190] sm:$0xc0] %v567_v58 }
  0x9f   : > { %591 = vst [vmem:[#allocation2 + $0x148] sm:$0xf] %v567_v58  ;;  %v463_v58 = vld [vmem:[%s1256_s17 + $0x28] sm:$0x3f] }
  0xa0   : > { %427 = vrot.lane.b32.xlu1 %v412_v63, %s1219_s24  ;;  %353 = vrot.lane.b32.xlu0 %v336_v0, %s1218_s23 }
  0xa2   : > { %429 = vrot.lane.b32.xlu2 %v413_v1, %s1219_s24  ;;  %v483_v4 = vpop.permute.xlu1 %482  ;;  %v1413_v5 = vpop.permute.xlu0 %480 }
  0xa3   : > { %v498_v6 = vsel %vm494_vm5, %v483_v4, %v1376_v39  ;;  %v497_v7 = vsel %vm494_vm5, %v1413_v5, %v483_v4 }
  0xa4   : > { %514 = vst [vmem:[#allocation2 + $0xb8] sm:$0x3f] %v498_v6  ;;  %v1420_v11 = vpop.permute.xlu2 %702  ;;  %v798_v12 = vld [vmem:[#allocation2 + $0x8] sm:$0xff] }
  0xa5   : > { %513 = vst [vmem:[#allocation2 + $0x190] sm:$0x3f] %v497_v7  ;;  %943 = vmatpush.msra.mxu3 %v798_v12  ;;  %v411_v7 = vrot.slane %v393_v62, 6 }
  0xa6   : > { %v797_v16 = vld [vmem:[#allocation2 + $0x148] sm:$0xff] }
  0xa7   : > { %920 = vmatpush.msra.mxu2 %v797_v16 }
  0xa8   : > { %634 = vrot.lane.b32.xlu1 %v620_v9, %s1214_s19  ;;  %431 = vrot.lane.b32.xlu0 %v414_v13, %s1219_s24 }
  0xaa   : > { %712 = vrot.lane.b32.xlu2 %v698_v17, %s1215_s20  ;;  %v344_v21 = vpop.permute.xlu1 %343  ;;  %v1429_v22 = vpop.permute.xlu0 %341 }
  0xab   : > { %v359_v23 = vsel %vm355_vm6, %v344_v21, %v1391_v49  ;;  %v358_v24 = vsel %vm355_vm6, %v1429_v22, %v344_v21  ;;  %v790_v25 = vld [vmem:[#allocation2 + $0xb8] sm:$0xff] }
  0xac   : > { %375 = vst [vmem:[#allocation2 + $0x98] sm:$0xf0] %v359_v23  ;;  %v1436_v28 = vpop.permute.xlu2 %265  ;;  %v789_v30 = vld [vmem:[#allocation2 + $0x190] sm:$0xff]  ;;  %944 = vmatpush.msra.mxu3 %v790_v25 }
  0xad   : > { %383 = vst [vmem:[#allocation2 + $0x140] sm:$0x3] %v359_v23  ;;  %921 = vmatpush.msra.mxu2 %v789_v30 }
  0xae   : > { %374 = vst [vmem:[#allocation2 + $0x118] sm:$0xf0] %v358_v24 }
  0xaf   : > { %382 = vst [vmem:[#allocation2 + $0x138] sm:$0x3] %v358_v24 }
  0xb0   : > { %273 = vrot.lane.b32.xlu1 %v257_v31, %s1220_s25  ;;  %271 = vrot.lane.b32.xlu0 %v256_v32, %s1220_s25 }
  0xb2   : > { %275 = vrot.lane.b32.xlu2 %v258_v35, %s1220_s25  ;;  %v422_v38 = vpop.permute.xlu1 %421  ;;  %v1444_v40 = vpop.permute.xlu0 %419 }
  0xb3   : > { %v437_v41 = vsel %vm433_vm7, %v422_v38, %v1406_v61  ;;  %v436_v42 = vsel %vm433_vm7, %v1444_v40, %v422_v38 }
  0xb4   : > { %453 = vst [vmem:[#allocation2 + $0x140] sm:$0xfc] %v437_v41  ;;  %v549_v43 = vpop.permute.xlu2 %548  ;;  %v752_v41 = vld [vmem:[%s1256_s17 + $0x38] sm:$0x3f] }
  0xb5   : > { %452 = vst [vmem:[#allocation2 + $0x138] sm:$0xfc] %v436_v42  ;;  %v566_v46 = vsel %vm564_vm4, %v549_v43, %v1399_v56 }
  0xb6   : > { %582 = vst [vmem:[#allocation2 + $0xf8] sm:$0xc0] %v566_v46 }
  0xb7   : > { %590 = vst [vmem:[#allocation2 + $0x68] sm:$0xf] %v566_v46 }
  0xb8   : > { %201 = vrot.lane.b32.xlu1 %v177_v47, %s1213_s18  ;;  %556 = vrot.lane.b32.xlu0 %v542_v44, %s1216_s21  ;;  %760 = vst [vmem:[#allocation2 + $0x198] sm:$0x3f] %v752_v41 }
  0xba   : > { %203 = vrot.lane.b32.xlu2 %v178_v48, %s1213_s18  ;;  %v627_v50 = vpop.permute.xlu1 %626  ;;  %v625_v51 = vpop.permute.xlu0 %624 }
  0xbb   : > { %v644_v52 = vsel %vm642_vm0, %v627_v50, %v1369_v34  ;;  %v643_v53 = vsel %vm642_vm0, %v625_v51, %v627_v50  ;;  %v782_v54 = vld [vmem:[#allocation2 + $0x140] sm:$0xff]  ;;  %v237_v34 = vld [vmem:[%s1256_s17 + $0x28] sm:$0x3f] }
  0xbc   : > { %660 = vst [vmem:[#allocation2 + $0x68] sm:$0xf0] %v644_v52  ;;  %v1461_v56 = vpop.permute.xlu2 %476  ;;  %v781_v57 = vld [vmem:[#allocation2 + $0x138] sm:$0xff]  ;;  %945 = vmatpush.msra.mxu3 %v782_v54  ;;  %v255_v6 = vrot.slane %v237_v34, 2 }
  0xbd   : > { %668 = vst [vmem:[#allocation2 + $0x100] sm:$0x3] %v644_v52  ;;  %922 = vmatpush.msra.mxu2 %v781_v57 }
  0xbe   : > { %659 = vst [vmem:[#allocation2] sm:$0xf0] %v643_v53 }
  0xbf   : > { %667 = vst [vmem:[#allocation2 + $0x10] sm:$0x3] %v643_v53  ;;  %v818_v50 = vld [vmem:[#allocation2 + $0x198] sm:$0x3f] }
  0xc0   : > { %486 = vrot.lane.b32.xlu1 %v463_v58, %s1217_s22  ;;  %205 = vrot.lane.b32.xlu0 %v179_v59, %s1213_s18 }
  0xc2   : > { %347 = vrot.lane.b32.xlu2 %v333_v60, %s1218_s23  ;;  %v1470_v63 = vpop.permute.xlu1 %263  ;;  %v705_v0 = vpop.permute.xlu0 %704 }
  0xc3   : > { %v280_v1 = vsel %vm277_vm8, %v1470_v63, %v1436_v28  ;;  %v721_v2 = vsel %vm720_vm3, %v1420_v11, %v705_v0  ;;  %v722_v3 = vsel %vm720_vm3, %v705_v0, %v1384_v45  ;;  %v796_v19 = vld [vmem:[#allocation2 + $0x68] sm:$0xff] }
  0xc4   : > { %296 = vst [vmem:[#allocation2 + $0xd8] sm:$0xc0] %v280_v1  ;;  %v340_v4 = vpop.permute.xlu2 %339 }
  0xc5   : > { %304 = vst [vmem:[#allocation2 + $0x118] sm:$0xf] %v280_v1  ;;  %v357_v9 = vsel %vm355_vm6, %v340_v4, %v1429_v22 }
  0xc6   : > { %737 = vst [vmem:[#allocation2 + $0x10] sm:$0xfc] %v721_v2 }
  0xc7   : > { %738 = vst [vmem:[#allocation2 + $0x100] sm:$0xfc] %v722_v3 }
  0xc8   : > { %373 = vst [vmem:[#allocation2 + $0x110] sm:$0xf0] %v357_v9  ;;  %269 = vrot.lane.b32.xlu1 %v255_v6, %s1220_s25  ;;  %425 = vrot.lane.b32.xlu0 %v411_v7, %s1219_s24 }
  0xc9   : > { %381 = vst [vmem:[#allocation2 + $0x188] sm:$0x3] %v357_v9 }
  0xca   : > { %199 = vrot.lane.b32.xlu2 %v176_v10, %s1213_s18  ;;  %v547_v11 = vpop.permute.xlu1 %546  ;;  %v1485_v45 = vpop.permute.xlu0 %267 }
  0xcb   : > { %v565_v12 = vsel %vm564_vm4, %v547_v11, %v549_v43  ;;  %v281_v13 = vsel %vm277_vm8, %v1436_v28, %v1485_v45  ;;  %v751_v28 = vld [vmem:[%s1256_s17 + $0x30] sm:$0x3f]  ;;  %v749_v11 = vld [vmem:[%s1256_s17 + $0x20] sm:$0x3f] }
  0xcc   : > { %581 = vst [vmem:[#allocation2 + $0xe8] sm:$0xc0] %v565_v12  ;;  %v260_v14 = vpop.permute.xlu2 %259  ;;  %v773_v15 = vld [vmem:[#allocation2 + $0x118] sm:$0xff] }
  0xcd   : > { %589 = vst [vmem:[#allocation2] sm:$0xf] %v565_v12  ;;  %v803_v16 = vld [vmem:[#allocation2 + $0x10] sm:$0xff]  ;;  %923 = vmatpush.msra.mxu2 %v773_v15  ;;  %v750_v12 = vld [vmem:[%s1256_s17 + $0x28] sm:$0x3f] }
  0xce   : > { %297 = vst [vmem:[#allocation2 + $0x18] sm:$0xc0] %v281_v13  ;;  %873 = vmatpush.msra.mxu0 %v803_v16  ;;  %v804_v17 = vld [vmem:[#allocation2 + $0x100] sm:$0xff] }
  0xcf   : > { %305 = vst [vmem:[#allocation2 + $0x98] sm:$0xf] %v281_v13  ;;  %896 = vmatpush.msra.mxu1 %v804_v17 }
  0xd0   : > { %759 = vst [vmem:[#allocation2 + $0x30] sm:$0x3f] %v751_v28 }
  0xd1   : > { %897 = vmatpush.msra.mxu1 %v796_v19  ;;  %757 = vst [vmem:[#allocation2 + $0x58] sm:$0x3f] %v749_v11 }
  0xd2   : > { %v1491_v20 = vpop.permute.xlu1 %197  ;;  %v196_v21 = vpop.permute.xlu0 %195  ;;  %758 = vst [vmem:[#allocation2 + $0xf0] sm:$0x3f] %v750_v12 }
  0xd3   : > { %v210_v22 = vsel %vm207_vm2, %v1360_v26, %v196_v21  ;;  %v211_v23 = vsel %vm207_vm2, %v196_v21, %v1491_v20 }
  0xd4   : > { %226 = vst [vmem:[#allocation2 + $0xd8] sm:$0x3f] %v210_v22  ;;  %v639_v24 = vpop.permute.xlu2 %638  ;;  %v795_v25 = vld [vmem:[#allocation2] sm:$0xff] }
  0xd5   : > { %227 = vst [vmem:[#allocation2 + $0x18] sm:$0x3f] %v211_v23  ;;  %874 = vmatpush.msra.mxu0 %v795_v25 }
  0xd6   : > { %v774_v27 = vld [vmem:[#allocation2 + $0x98] sm:$0xff] }
  0xd7   : > { %946 = vmatpush.msra.mxu3 %v774_v27  ;;  %v817_v38 = vld [vmem:[#allocation2 + $0x30] sm:$0x3f] }
  0xd9   : > { %v816_v25 = vld [vmem:[#allocation2 + $0xf0] sm:$0x3f] }
  0xda   : > { %v338_v30 = vpop.permute.xlu1 %337  ;;  %v479_v31 = vpop.permute.xlu0 %478 }
  0xdb   : > { %v356_v32 = vsel %vm355_vm6, %v338_v30, %v340_v4  ;;  %v495_v26 = vsel %vm494_vm5, %v1461_v56, %v479_v31  ;;  %v765_v33 = vld [vmem:[#allocation2 + $0xd8] sm:$0xff]  ;;  %v496_v35 = vsel %vm494_vm5, %v479_v31, %v1413_v5 }
  0xdc   : > { %372 = vst [vmem:[#allocation2 + $0x180] sm:$0xf0] %v356_v32  ;;  %v717_v36 = vpop.permute.xlu2 %716  ;;  %924 = vmatpush.msra.mxu2 %v765_v33  ;;  %v766_v37 = vld [vmem:[#allocation2 + $0x18] sm:$0xff] }
  0xdd   : > { %380 = vst [vmem:[#allocation2 + $0xe0] sm:$0x3] %v356_v32  ;;  %947 = vmatpush.msra.mxu3 %v766_v37 }
  0xde   : > { %511 = vst [vmem:[#allocation2 + $0xe8] sm:$0x3f] %v495_v26  ;;  %1176 = vmatpush.msk.msrb.mxu2 %vm838_vm1, %v817_v38 }
  0xdf   : > { %512 = vst [vmem:[#allocation2 + $0xf8] sm:$0x3f] %v496_v35  ;;  %1179 = vmatpush.msk.msrb.mxu3 %vm838_vm1, %v818_v50 }
  0xe2   : > { %v418_v42 = vpop.permute.xlu1 %417  ;;  %v416_v43 = vpop.permute.xlu0 %415 }
  0xe3   : > { %v435_v44 = vsel %vm433_vm7, %v418_v42, %v1444_v40  ;;  %v434_v46 = vsel %vm433_vm7, %v416_v43, %v418_v42  ;;  %v1554_v42 = vld [vmem:[%s1658_s1] sm:$0xff] }
  0xe4   : > { %451 = vst [vmem:[#allocation2 + $0x188] sm:$0xfc] %v435_v44  ;;  %v561_v5 = vpop.permute.xlu2 %560  ;;  %1165 = vmatmul.msk.f32.vlgmr.msra.gmra.mxu2 %vm831_vm9, %v1554_v42  ;;  %1168 = vmatmul.msk.f32.vlgmr.msra.gmra.mxu3 %vm831_vm9, %v1554_v42 }
  0xe5   : > { %450 = vst [vmem:[#allocation2 + $0xe0] sm:$0xfc] %v434_v46  ;;  %v787_v47 = vld [vmem:[#allocation2 + $0xe8] sm:$0xff] }
  0xe6   : > { %875 = vmatpush.msra.mxu0 %v787_v47  ;;  %v788_v48 = vld [vmem:[#allocation2 + $0xf8] sm:$0xff] }
  0xe7   : > { %898 = vmatpush.msra.mxu1 %v788_v48 }
  0xea   : > { %v1509_v51 = vpop.permute.xlu1 %636  ;;  %v262_v52 = vpop.permute.xlu0 %261 }
  0xeb   : > { %v649_v53 = vsel %vm642_vm0, %v1509_v51, %v639_v24  ;;  %v278_v40 = vsel %vm277_vm8, %v260_v14, %v262_v52  ;;  %v780_v54 = vld [vmem:[#allocation2 + $0x188] sm:$0xff]  ;;  %v279_v55 = vsel %vm277_vm8, %v262_v52, %v1470_v63 }
  0xec   : > { %665 = vst [vmem:[#allocation2 + $0xd0] sm:$0xf0] %v649_v53  ;;  %v1516_v56 = vpop.permute.xlu2 %490  ;;  %v779_v57 = vld [vmem:[#allocation2 + $0xe0] sm:$0xff]  ;;  %899 = vmatpush.msra.mxu1 %v780_v54  ;;  %v1221_v54 = vmov 0  }
  0xed   : > { %673 = vst [vmem:[#allocation2 + $0xa0] sm:$0x3] %v649_v53  ;;  %876 = vmatpush.msra.mxu0 %v779_v57  ;;  %v1575_v53 = vld [vmem:[%s1658_s1 + $0x8] sm:$0x1]  ;;  %1203 = vset.pattern.permute.xlu0 %v1221_v54 }
  0xee   : > { %294 = vst [vmem:[#allocation2 + $0xb0] sm:$0xc0] %v278_v40  ;;  %1166 = vmatmul.msk.f32.gmra.mxu2 %vm831_vm9, %v1575_v53  ;;  %1169 = vmatmul.msk.f32.gmra.mxu3 %vm831_vm9, %v1575_v53 }
  0xef   : > { %295 = vst [vmem:[#allocation2 + $0x1b0] sm:$0xc0] %v279_v55  ;;  %1204 = vset.pattern.permute.xlu1 %v1221_v54 }
  0xf0   : > { %302 = vst [vmem:[#allocation2 + $0x180] sm:$0xf] %v278_v40 }
  0xf1   : > { %303 = vst [vmem:[#allocation2 + $0x110] sm:$0xf] %v279_v55 }
  0xf2   : > { %v715_v58 = vpop.permute.xlu1 %714  ;;  %v641_v59 = vpop.permute.xlu0 %640 }
  0xf3   : > { %v727_v60 = vsel %vm720_vm3, %v715_v58, %v717_v36  ;;  %v650_v34 = vsel %vm642_vm0, %v639_v24, %v641_v59  ;;  %v815_v24 = vld [vmem:[#allocation2 + $0x58] sm:$0x3f] }
  0xf4   : > { %743 = vst [vmem:[#allocation2 + $0xa0] sm:$0xfc] %v727_v60  ;;  %v352_v62 = vpop.permute.xlu2 %351 }
  0xf5   : > { %666 = vst [vmem:[#allocation2 + $0x1a0] sm:$0xf0] %v650_v34  ;;  %v763_v1 = vld [vmem:[#allocation2 + $0xb0] sm:$0xff] }
  0xf6   : > { %674 = vst [vmem:[#allocation2 + $0x158] sm:$0x3] %v650_v34  ;;  %v764_v2 = vld [vmem:[#allocation2 + $0x1b0] sm:$0xff] }
  0xf7   : > { %v771_v63 = vld [vmem:[#allocation2 + $0x180] sm:$0xff] }
  0xf8   : > { %877 = vmatpush.msra.mxu0 %v771_v63  ;;  %v772_v0 = vld [vmem:[#allocation2 + $0x110] sm:$0xff] }
  0xf9   : > { %900 = vmatpush.msra.mxu1 %v772_v0 }
  0xfa   : > { %878 = vmatpush.msra.mxu0 %v763_v1  ;;  %v1520_v3 = vpop.permute.xlu1 %558  ;;  %v719_v4 = vpop.permute.xlu0 %718 }
  0xfb   : > { %901 = vmatpush.msra.mxu1 %v764_v2  ;;  %v571_v6 = vsel %vm564_vm4, %v1520_v3, %v561_v5  ;;  %v728_v7 = vsel %vm720_vm3, %v717_v36, %v719_v4  ;;  %v809_v9 = vld [vmem:[#allocation2 + $0xa0] sm:$0xff]  ;;  %1159 = vmatmul.msk.f32.vlgmr.msra.gmra.mxu0 %vm831_vm9, %v1554_v42 }
  0xfc   : > { %587 = vst [vmem:[#allocation2 + $0x178] sm:$0xc0] %v571_v6  ;;  %v1525_v10 = vpop.permute.xlu2 %429  ;;  %1011 = vmatpush.msrb.mxu2 %v809_v9  ;;  %1170 = vmatpush.msk.msrb.mxu0 %vm838_vm1, %v815_v24 }
  0xfd   : > { %595 = vst [vmem:[#allocation2 + $0xd0] sm:$0xf] %v571_v6  ;;  %1173 = vmatpush.msk.msrb.mxu1 %vm838_vm1, %v816_v25  ;;  %v820_v6 = vld [vmem:[%s1659_s2 + $0x8] sm:$0x1] }
  0xfe   : > { %744 = vst [vmem:[#allocation2 + $0x158] sm:$0xfc] %v728_v7  ;;  %1162 = vmatmul.msk.f32.vlgmr.msra.gmra.mxu1 %vm831_vm9, %v1554_v42  ;;  %828 = vperm.xlu1 %1204, %v820_v6  }
 0x102   : > { %v1529_v13 = vpop.permute.xlu1 %488  ;;  %v563_v14 = vpop.permute.xlu0 %562 }
 0x103   : > { %v501_v15 = vsel %vm494_vm5, %v1529_v13, %v1516_v56  ;;  %v572_v16 = vsel %vm564_vm4, %v561_v5, %v563_v14  ;;  %1160 = vmatmul.msk.f32.gmra.mxu0 %vm831_vm9, %v1575_v53 }
 0x104   : > { %517 = vst [vmem:[#allocation2 + $0x178] sm:$0x3f] %v501_v15  ;;  %v713_v17 = vpop.permute.xlu2 %712  ;;  %v801_v19 = vld [vmem:[#allocation2 + $0xd0] sm:$0xff] }
 0x105   : > { %588 = vst [vmem:[#allocation2 + $0xc8] sm:$0xc0] %v572_v16  ;;  %v725_v21 = vsel %vm720_vm3, %v1351_v18, %v713_v17  ;;  %v726_v22 = vsel %vm720_vm3, %v713_v17, %v715_v58  ;;  %1012 = vmatpush.msrb.mxu2 %v801_v19  ;;  %v810_v23 = vld [vmem:[#allocation2 + $0x158] sm:$0xff] }
 0x106   : > { %596 = vst [vmem:[#allocation2 + $0x1a0] sm:$0xf] %v572_v16  ;;  %1034 = vmatpush.msrb.mxu3 %v810_v23  ;;  %1163 = vmatmul.msk.f32.gmra.mxu1 %vm831_vm9, %v1575_v53 }
 0x107   : > { %741 = vst [vmem:[#allocation2 + $0x70] sm:$0xfc] %v725_v21 }
 0x108   : > { %742 = vst [vmem:[#allocation2 + $0x78] sm:$0xfc] %v726_v22 }
 0x10a   : > { %v350_v27 = vpop.permute.xlu1 %349  ;;  %v493_v28 = vpop.permute.xlu0 %492 }
 0x10b   : > { %v362_v30 = vsel %vm355_vm6, %v350_v27, %v352_v62  ;;  %v502_v18 = vsel %vm494_vm5, %v1516_v56, %v493_v28  ;;  %v793_v31 = vld [vmem:[#allocation2 + $0x178] sm:$0xff] }
 0x10c   : > { %378 = vst [vmem:[#allocation2 + $0x108] sm:$0xf0] %v362_v30  ;;  %v276_v32 = vpop.permute.xlu2 %275  ;;  %1013 = vmatpush.msrb.mxu2 %v793_v31 }
 0x10d   : > { %386 = vst [vmem:[#allocation2 + $0x1b8] sm:$0x3] %v362_v30  ;;  %v802_v26 = vld [vmem:[#allocation2 + $0x1a0] sm:$0xff] }
 0x10e   : > { %518 = vst [vmem:[#allocation2 + $0xc8] sm:$0x3f] %v502_v18  ;;  %1035 = vmatpush.msrb.mxu3 %v802_v26 }
 0x112   : > { %v1543_v33 = vpop.permute.xlu1 %427  ;;  %v354_v35 = vpop.permute.xlu0 %353 }
 0x113   : > { %v440_v36 = vsel %vm433_vm7, %v1543_v33, %v1525_v10  ;;  %v363_v37 = vsel %vm355_vm6, %v352_v62, %v354_v35 }
 0x114   : > { %456 = vst [vmem:[#allocation2 + $0x1b8] sm:$0xfc] %v440_v36  ;;  %v1549_v38 = vpop.permute.xlu2 %203 }
 0x115   : > { %379 = vst [vmem:[#allocation2 + $0x60] sm:$0xf0] %v363_v37  ;;  %v794_v41 = vld [vmem:[#allocation2 + $0xc8] sm:$0xff] }
 0x116   : > { %387 = vst [vmem:[#allocation2 + $0x28] sm:$0x3] %v363_v37  ;;  %1036 = vmatpush.msrb.mxu3 %v794_v41 }
 0x11a   : > { %v635_v43 = vpop.permute.xlu1 %634  ;;  %v432_v44 = vpop.permute.xlu0 %431 }
 0x11b   : > { %v647_v46 = vsel %vm642_vm0, %v1339_v8, %v635_v43  ;;  %v648_v5 = vsel %vm642_vm0, %v635_v43, %v1509_v51  ;;  %v785_v47 = vld [vmem:[#allocation2 + $0x1b8] sm:$0xff]  ;;  %v441_v50 = vsel %vm433_vm7, %v1525_v10, %v432_v44 }
 0x11c   : > { %663 = vst [vmem:[#allocation2 + $0x40] sm:$0xf0] %v647_v46  ;;  %v348_v48 = vpop.permute.xlu2 %347  ;;  %1014 = vmatpush.msrb.mxu2 %v785_v47 }
 0x11d   : > { %664 = vst [vmem:[#allocation2 + $0xa8] sm:$0xf0] %v648_v5  ;;  %v360_v52 = vsel %vm355_vm6, %v1391_v49, %v348_v48  ;;  %v361_v8 = vsel %vm355_vm6, %v348_v48, %v350_v27  ;;  %v819_v49 = vld [vmem:[%s1659_s2] sm:$0xff] }
 0x11e   : > { %671 = vst [vmem:[#allocation2 + $0x70] sm:$0x3] %v647_v46  ;;  %823 = vperm.xlu0 %1203, %v819_v49  }
 0x11f   : > { %672 = vst [vmem:[#allocation2 + $0x78] sm:$0x3] %v648_v5 }
 0x120   : > { %457 = vst [vmem:[#allocation2 + $0x28] sm:$0xfc] %v441_v50 }
 0x121   : > { %376 = vst [vmem:[#allocation2 + $0x120] sm:$0xf0] %v360_v52 }
 0x122   : > { %377 = vst [vmem:[#allocation2 + $0x150] sm:$0xf0] %v361_v8  ;;  %v274_v51 = vpop.permute.xlu1 %273  ;;  %v272_v40 = vpop.permute.xlu0 %271 }
 0x123   : > { %384 = vst [vmem:[#allocation2 + $0x80] sm:$0x3] %v360_v52  ;;  %v285_v55 = vsel %vm277_vm8, %v274_v51, %v276_v32  ;;  %v284_v56 = vsel %vm277_vm8, %v272_v40, %v274_v51 }
 0x124   : > { %385 = vst [vmem:[#allocation2 + $0x1a8] sm:$0x3] %v361_v8  ;;  %v200_v57 = vpop.permute.xlu2 %199 }
 0x125   : > { %301 = vst [vmem:[#allocation2 + $0x48] sm:$0xc0] %v285_v55  ;;  %v807_v58 = vld [vmem:[#allocation2 + $0x70] sm:$0xff]  ;;  %v212_v59 = vsel %vm207_vm2, %v1491_v20, %v200_v57 }
 0x126   : > { %309 = vst [vmem:[#allocation2 + $0x60] sm:$0xf] %v285_v55  ;;  %965 = vmatpush.msrb.mxu0 %v807_v58  ;;  %v808_v60 = vld [vmem:[#allocation2 + $0x78] sm:$0xff] }
 0x127   : > { %300 = vst [vmem:[#allocation2 + $0x130] sm:$0xc0] %v284_v56  ;;  %988 = vmatpush.msrb.mxu1 %v808_v60  ;;  %v786_v34 = vld [vmem:[#allocation2 + $0x28] sm:$0xff] }
 0x128   : > { %308 = vst [vmem:[#allocation2 + $0x108] sm:$0xf] %v284_v56  ;;  %1037 = vmatpush.msrb.mxu3 %v786_v34 }
 0x129   : > { %228 = vst [vmem:[#allocation2 + $0x50] sm:$0x3f] %v212_v59 }
 0x12a   : > { %v202_v62 = vpop.permute.xlu1 %201  ;;  %v557_v63 = vpop.permute.xlu0 %556 }
 0x12b   : > { %v213_v0 = vsel %vm207_vm2, %v200_v57, %v202_v62  ;;  %v214_v1 = vsel %vm207_vm2, %v202_v62, %v1549_v38  ;;  %v569_v2 = vsel %vm564_vm4, %v1363_v29, %v557_v63  ;;  %v570_v20 = vsel %vm564_vm4, %v557_v63, %v1520_v3 }
 0x12c   : > { %229 = vst [vmem:[#allocation2 + $0x168] sm:$0x3f] %v213_v0 }
 0x12d   : > { %230 = vst [vmem:[#allocation2 + $0x130] sm:$0x3f] %v214_v1  ;;  %v778_v4 = vld [vmem:[#allocation2 + $0x60] sm:$0xff] }
 0x12e   : > { %585 = vst [vmem:[#allocation2 + $0x90] sm:$0xc0] %v569_v2  ;;  %1038 = vmatpush.msrb.mxu3 %v778_v4 }
 0x12f   : > { %586 = vst [vmem:[#allocation2 + $0xc0] sm:$0xc0] %v570_v20  ;;  %v777_v7 = vld [vmem:[#allocation2 + $0x108] sm:$0xff] }
 0x130   : > { %593 = vst [vmem:[#allocation2 + $0x40] sm:$0xf] %v569_v2  ;;  %1015 = vmatpush.msrb.mxu2 %v777_v7 }
 0x131   : > { %594 = vst [vmem:[#allocation2 + $0xa8] sm:$0xf] %v570_v20 }
 0x132   : > { %v487_v9 = vpop.permute.xlu1 %486  ;;  %v206_v29 = vpop.permute.xlu0 %205 }
 0x133   : > { %v499_v10 = vsel %vm494_vm5, %v1376_v39, %v487_v9  ;;  %v500_v3 = vsel %vm494_vm5, %v487_v9, %v1529_v13  ;;  %v215_v11 = vsel %vm207_vm2, %v1549_v38, %v206_v29 }
 0x134   : > { %515 = vst [vmem:[#allocation2 + $0x90] sm:$0x3f] %v499_v10  ;;  %v769_v12 = vld [vmem:[#allocation2 + $0x130] sm:$0xff] }
 0x135   : > { %516 = vst [vmem:[#allocation2 + $0xc0] sm:$0x3f] %v500_v3  ;;  %1016 = vmatpush.msrb.mxu2 %v769_v12 }
 0x136   : > { %231 = vst [vmem:[#allocation2 + $0x48] sm:$0x3f] %v215_v11  ;;  %1177 = vmatmul.msk.f32.vlgmr.msrb.gmra.mxu2 %vm831_vm9, %v1554_v42 }
 0x137   : > { %v799_v14 = vld [vmem:[#allocation2 + $0x40] sm:$0xff] }
 0x138   : > { %966 = vmatpush.msrb.mxu0 %v799_v14  ;;  %v800_v15 = vld [vmem:[#allocation2 + $0xa8] sm:$0xff] }
 0x139   : > { %989 = vmatpush.msrb.mxu1 %v800_v15 }
 0x13a   : > { %v270_v16 = vpop.permute.xlu1 %269  ;;  %v426_v39 = vpop.permute.xlu0 %425 }
 0x13b   : > { %v282_v13 = vsel %vm277_vm8, %v1485_v45, %v270_v16  ;;  %v283_v17 = vsel %vm277_vm8, %v270_v16, %v272_v40  ;;  %v791_v19 = vld [vmem:[#allocation2 + $0x90] sm:$0xff]  ;;  %v438_v22 = vsel %vm433_vm7, %v1406_v61, %v426_v39  ;;  %v439_v24 = vsel %vm433_vm7, %v426_v39, %v1543_v33 }
 0x13c   : > { %298 = vst [vmem:[#allocation2 + $0x50] sm:$0xc0] %v282_v13  ;;  %967 = vmatpush.msrb.mxu0 %v791_v19  ;;  %v792_v21 = vld [vmem:[#allocation2 + $0xc0] sm:$0xff] }
 0x13d   : > { %299 = vst [vmem:[#allocation2 + $0x168] sm:$0xc0] %v283_v17  ;;  %990 = vmatpush.msrb.mxu1 %v792_v21  ;;  %v770_v23 = vld [vmem:[#allocation2 + $0x48] sm:$0xff] }
 0x13e   : > { %306 = vst [vmem:[#allocation2 + $0x120] sm:$0xf] %v282_v13  ;;  %1039 = vmatpush.msrb.mxu3 %v770_v23  ;;  %1178 = vmatmul.msk.f32.gmra.mxu2 %vm831_vm9, %v1575_v53 }
 0x13f   : > { %307 = vst [vmem:[#allocation2 + $0x150] sm:$0xf] %v283_v17  ;;  %1180 = vmatmul.msk.f32.vlgmr.msrb.gmra.mxu3 %vm831_vm9, %v1554_v42 }
 0x140   : > { %454 = vst [vmem:[#allocation2 + $0x80] sm:$0xfc] %v438_v22 }
 0x141   : > { %455 = vst [vmem:[#allocation2 + $0x1a8] sm:$0xfc] %v439_v24 }
 0x143   : > { %v767_v28 = vld [vmem:[#allocation2 + $0x50] sm:$0xff] }
 0x144   : > { %v768_v30 = vld [vmem:[#allocation2 + $0x168] sm:$0xff] }
 0x145   : > { %v775_v25 = vld [vmem:[#allocation2 + $0x120] sm:$0xff] }
 0x146   : > { %v776_v27 = vld [vmem:[#allocation2 + $0x150] sm:$0xff] }
 0x147   : > { %v783_v45 = vld [vmem:[#allocation2 + $0x80] sm:$0xff]  ;;  %1181 = vmatmul.msk.f32.gmra.mxu3 %vm831_vm9, %v1575_v53 }
 0x148   : > { %968 = vmatpush.msrb.mxu0 %v783_v45  ;;  %v784_v61 = vld [vmem:[#allocation2 + $0x1a8] sm:$0xff] }
 0x149   : > { %991 = vmatpush.msrb.mxu1 %v784_v61 }
 0x14a   : > { %969 = vmatpush.msrb.mxu0 %v775_v25 }
 0x14b   : > { %992 = vmatpush.msrb.mxu1 %v776_v27 }
 0x14c   : > { %970 = vmatpush.msrb.mxu0 %v767_v28 }
 0x14d   : > { %993 = vmatpush.msrb.mxu1 %v768_v30  ;;  %1171 = vmatmul.msk.f32.vlgmr.msrb.gmra.mxu0 %vm831_vm9, %v1554_v42 }
 0x14e   : > { %1174 = vmatmul.msk.f32.vlgmr.msrb.gmra.mxu1 %vm831_vm9, %v1554_v42 }
 0x155   : > { %1172 = vmatmul.msk.f32.gmra.mxu0 %vm831_vm9, %v1575_v53 }
 0x156   : > { %1175 = vmatmul.msk.f32.gmra.mxu1 %vm831_vm9, %v1575_v53 }
 0x167   : > { %v926_v37 = vpop.f32.mrf.mxu2  ;;  %v949_v38 = vpop.f32.mrf.mxu3 }
 0x170   : > { %v829_v53 = vpop.permute.xlu1 %828 }
 0x171   : > { %v929_v51 = vpop.f32.mrf.mxu2  ;;  %v952_v40 = vpop.f32.mrf.mxu3 }
 0x172   : > { %v930_v54 = vadd.f32 %v929_v51, %v829_v53  ;;  %v953_v55 = vadd.f32 %v952_v40, %v829_v53 }
 0x174   : > { %v1057_v58 = vmul.f32 0.5, %v930_v54  ;;  %v1058_v59 = vmul.f32 0.5, %v953_v55 }
 0x176   : > { %v1073_v62 = vmax.f32 %v930_v54, %v1057_v58  ;;  %v1074_v63 = vmax.f32 %v953_v55, %v1058_v59 }
 0x178   : > { %v880_v18 = vpop.f32.mrf.mxu0  ;;  %1089 = vst [vmem:[%s1636_s10 + $0x50] sm:$0x1] %v1073_v62 }
 0x179   : > { %1090 = vst [vmem:[%s1636_s10 + $0x58] sm:$0x1] %v1074_v63 }
 0x17b   : > { %v903_v31 = vpop.f32.mrf.mxu1 }
 0x180   : > { %v883_v50 = vpop.f32.mrf.mxu0 }
 0x181   : > { %v884_v8 = vadd.f32 %v883_v50, %v829_v53 }
 0x183   : > { %v906_v52 = vpop.f32.mrf.mxu1  ;;  %v1055_v56 = vmul.f32 0.5, %v884_v8 }
 0x184   : > { %v907_v49 = vadd.f32 %v906_v52, %v829_v53 }
 0x185   : > { %v1071_v60 = vmax.f32 %v884_v8, %v1055_v56 }
 0x186   : > { %v1056_v57 = vmul.f32 0.5, %v907_v49 }
 0x187   : > { %1087 = vst [vmem:[%s1636_s10 + $0x40] sm:$0x1] %v1071_v60 }
 0x188   : > { %v1072_v34 = vmax.f32 %v907_v49, %v1056_v57 }
 0x18a   : > { %1088 = vst [vmem:[%s1636_s10 + $0x48] sm:$0x1] %v1072_v34 }
 0x190   : > { %v824_v32 = vpop.permute.xlu0 %823 }
 0x191   : > { %v881_v26 = vadd.f32 %v880_v18, %v824_v32  ;;  %v904_v33 = vadd.f32 %v903_v31, %v824_v32  ;;  %v927_v41 = vadd.f32 %v926_v37, %v824_v32  ;;  %v950_v44 = vadd.f32 %v949_v38, %v824_v32 }
 0x193   : > { %v1047_v35 = vmul.f32 0.5, %v881_v26  ;;  %v1048_v36 = vmul.f32 0.5, %v904_v33  ;;  %v1049_v46 = vmul.f32 0.5, %v927_v41  ;;  %v1050_v5 = vmul.f32 0.5, %v950_v44 }
 0x195   : > { %v1063_v42 = vmax.f32 %v881_v26, %v1047_v35  ;;  %v1064_v43 = vmax.f32 %v904_v33, %v1048_v36  ;;  %v1065_v47 = vmax.f32 %v927_v41, %v1049_v46  ;;  %v1066_v48 = vmax.f32 %v950_v44, %v1050_v5 }
 0x197   : > { %1079 = vst [vmem:[%s1636_s10] sm:$0xff] %v1063_v42 }
 0x198   : > { %1080 = vst [vmem:[%s1636_s10 + $0x8] sm:$0xff] %v1064_v43 }
 0x199   : > { %1081 = vst [vmem:[%s1636_s10 + $0x10] sm:$0xff] %v1065_v47 }
 0x19a   : > { %1082 = vst [vmem:[%s1636_s10 + $0x18] sm:$0xff] %v1066_v48 }
 0x1b9   : > { %v1018_v0 = vpop.f32.mrf.mxu2 }
 0x1ba   : > { %v1019_v1 = vadd.f32 %v1018_v0, %v824_v32 }
 0x1bc   : > { %v1053_v2 = vmul.f32 0.5, %v1019_v1 }
 0x1be   : > { %v1069_v20 = vmax.f32 %v1019_v1, %v1053_v2 }
 0x1c0   : > { %1085 = vst [vmem:[%s1636_s10 + $0x30] sm:$0xff] %v1069_v20 }
 0x1c1   : > { %v1021_v4 = vpop.f32.mrf.mxu2 }
 0x1c2   : > { %v1041_v6 = vpop.f32.mrf.mxu3  ;;  %v1022_v7 = vadd.f32 %v1021_v4, %v829_v53 }
 0x1c3   : > { %v1042_v9 = vadd.f32 %v1041_v6, %v824_v32 }
 0x1c4   : > { %v1061_v29 = vmul.f32 0.5, %v1022_v7 }
 0x1c5   : > { %v1054_v10 = vmul.f32 0.5, %v1042_v9 }
 0x1c6   : > { %v1077_v3 = vmax.f32 %v1022_v7, %v1061_v29 }
 0x1c7   : > { %v1070_v11 = vmax.f32 %v1042_v9, %v1054_v10 }
 0x1c8   : > { %1093 = vst [vmem:[%s1636_s10 + $0x70] sm:$0x1] %v1077_v3 }
 0x1c9   : > { %1086 = vst [vmem:[%s1636_s10 + $0x38] sm:$0xff] %v1070_v11 }
 0x1ca   : > { %v972_v12 = vpop.f32.mrf.mxu0  ;;  %v1044_v14 = vpop.f32.mrf.mxu3 }
 0x1cb   : > { %v973_v15 = vadd.f32 %v972_v12, %v824_v32  ;;  %v995_v16 = vpop.f32.mrf.mxu1  ;;  %v1045_v39 = vadd.f32 %v1044_v14, %v829_v53 }
 0x1cc   : > { %v996_v13 = vadd.f32 %v995_v16, %v824_v32 }
 0x1cd   : > { %v1051_v17 = vmul.f32 0.5, %v973_v15  ;;  %v1062_v19 = vmul.f32 0.5, %v1045_v39 }
 0x1ce   : > { %v1052_v21 = vmul.f32 0.5, %v996_v13 }
 0x1cf   : > { %v1067_v22 = vmax.f32 %v973_v15, %v1051_v17  ;;  %v1078_v23 = vmax.f32 %v1045_v39, %v1062_v19 }
 0x1d0   : > { %v1068_v24 = vmax.f32 %v996_v13, %v1052_v21 }
 0x1d1   : > { %1083 = vst [vmem:[%s1636_s10 + $0x20] sm:$0xff] %v1067_v22 }
 0x1d2   : > { %1084 = vst [vmem:[%s1636_s10 + $0x28] sm:$0xff] %v1068_v24  ;;  %v975_v45 = vpop.f32.mrf.mxu0 }
 0x1d3   : > { %1094 = vst [vmem:[%s1636_s10 + $0x78] sm:$0x1] %v1078_v23  ;;  %v976_v61 = vadd.f32 %v975_v45, %v829_v53  ;;  %v998_v25 = vpop.f32.mrf.mxu1 }
 0x1d4   : > { %v999_v27 = vadd.f32 %v998_v25, %v829_v53 }
 0x1d5   : > { %v1059_v28 = vmul.f32 0.5, %v976_v61 }
 0x1d6   : > { %v1060_v30 = vmul.f32 0.5, %v999_v27 }
 0x1d7   : > { %v1075_v18 = vmax.f32 %v976_v61, %v1059_v28 }
 0x1d8   : > { %v1076_v31 = vmax.f32 %v999_v27, %v1060_v30 }
 0x1d9   : > { %1091 = vst [vmem:[%s1636_s10 + $0x60] sm:$0x1] %v1075_v18 }
 0x1da   : > { %1092 = vst [vmem:[%s1636_s10 + $0x68] sm:$0x1] %v1076_v31 }
 0x1db PF: > { %s13_s12 = sadd.s32 1, %s1211_s12  }
 0x1dc   : > { %p10_p4 = scmp.ge.s32.totalorder %s13_s12, 4  }
 0x1de   :  { %12 = sbr.rel (!%p10_p4) target bundleno = 1 (0x1), region = 62 }

</bundles_post_ra>
